<compile_context>
chip_gen: v7x
topology: tpu7x:2x2x1
jax: 0.10.0
libtpu: 0.0.40
codegen_flags: <defaults>
</compile_context>

<pallas_src>
import functools
import math

import jax
import jax.numpy as jnp
import numpy as np
from jax import lax
from jax.experimental import pallas as pl
from jax.experimental.pallas import tpu as pltpu


def mha_kernel(q_ref, k_ref, v_ref, madd_ref,
               wq_ref, bq_ref, wk_ref, bk_ref, wv_ref, bv_ref,
               wo_ref, bo_ref, out_ref, k_sc, v_sc, *, n_head, d_k):
    f32 = jnp.float32
    bf16 = jnp.bfloat16

    # --- K/V projection: once per batch (first query tile), cached in VMEM ---
    @pl.when(pl.program_id(1) == 0)
    def _():
        kx = k_ref[0]                                    # (T2, F) bf16
        vx = v_ref[0]                                    # (T2, F) bf16
        k_sc[...] = (jnp.dot(kx, wk_ref[...], preferred_element_type=f32)
                     + bk_ref[...]).astype(bf16)
        v_sc[...] = (jnp.dot(vx, wv_ref[...], preferred_element_type=f32)
                     + bv_ref[...]).astype(bf16)

    # --- Q projection for this tile (bf16 MXU, f32 accumulate) ---
    qx = q_ref[0]                                        # (tq, F) bf16
    q = jnp.dot(qx, wq_ref[...], preferred_element_type=f32) + bq_ref[...]
    # Fold 1/sqrt(d_k) into q once instead of scaling every score block.
    q = q * jnp.float32(1.0 / math.sqrt(d_k))
    qb = q.astype(bf16)

    kb = k_sc[...]                                       # (T2, F) bf16
    vb = v_sc[...]                                       # (T2, F) bf16
    wo_b = wo_ref[...]                                   # (F, F)  bf16

    # Additive f32 mask (0 valid / finfo.min masked), precomputed in wrapper.
    mask_add = madd_ref[0]                               # (1 or tq, T2)
    # Rows with every key masked give a uniform softmax; they are zeroed once
    # after the out-projection to match the reference's masked_fill(0.0).
    row_keep = (jnp.max(mask_add, axis=-1, keepdims=True) == 0.0).astype(f32)

    ctxs = []
    for h in range(n_head):
        lo = h * d_k
        hi = lo + d_k
        qh = qb[:, lo:hi]                                # (tq, d_k)
        kh = kb[:, lo:hi]                                # (T2, d_k)
        vh = vb[:, lo:hi]                                # (T2, d_k)

        # QK^T without materializing kh.T: contract on axis 1 of both sides.
        scores = lax.dot_general(qh, kh, (((1,), (1,)), ((), ())),
                                 preferred_element_type=f32)   # (tq, T2)
        scores = scores + mask_add

        # f32 softmax (EUP exp + approx reciprocal).  Masked entries underflow
        # to exactly 0 in exp(), so no post-softmax select is needed.
        m = jnp.max(scores, axis=-1, keepdims=True)
        e = jnp.exp(scores - m)
        attn = e * pl.reciprocal(jnp.sum(e, axis=-1, keepdims=True), approx=True)
        # TODO(synk): dropout on attn omitted (module in eval mode -> identity).

        ctxs.append(jnp.dot(attn.astype(bf16), vh, preferred_element_type=f32))

    # Single full-F contraction for the output projection (full MXU width)
    # instead of H per-head (contraction = d_k) matmuls + f32 adds.
    ctx_all = jnp.concatenate(ctxs, axis=-1).astype(bf16)        # (tq, F)
    out = jnp.dot(ctx_all, wo_b, preferred_element_type=f32)     # (tq, F)
    out = out * row_keep + bo_ref[...]
    out_ref[0] = out.astype(out_ref.dtype)


def _round_up(x, m):
    return ((x + m - 1) // m) * m


def _hw_params():
    """Generation-aware scoped-VMEM limit and preferred query tile."""
    mib = 1024 * 1024
    try:
        cap = pltpu.get_tpu_info().vmem_capacity_bytes
    except Exception:
        cap = 64 * mib                      # conservative (v7x per-TC VMEM)
    vmem_limit = int(max(32 * mib, min(cap - 24 * mib, 96 * mib)))
    tq_pref = 512 if cap >= 100 * mib else 256
    return vmem_limit, tq_pref


def _choose_tile(t1, pref):
    """Query-tile size and padded T1 (tile divides padded length, 8-aligned)."""
    if t1 <= 128:
        tq = _round_up(t1, 8)
        return tq, tq
    tq = 128
    t1p128 = _round_up(t1, 128)
    for cand in (512, 384, 256):
        if cand <= pref and t1p128 % cand == 0:
            tq = cand
            break
    return tq, _round_up(t1, tq)


def multi_headed_attention(query, key, value, mask, params, n_head):
    """params = (wq, bq, wk, bk, wv, bv, wo, bo) with W: (in, out), b: (1, out)."""
    B, T1, F = query.shape
    T2 = key.shape[1]
    d_k = F // n_head
    wq, bq, wk, bk, wv, bv, wo, bo = params

    vmem_limit, tq_pref = _hw_params()
    tq, T1p = _choose_tile(T1, tq_pref)
    nq = T1p // tq

    # bf16 activations + weights (MXU-native, halves streamed DMA); f32 biases.
    qx = query.astype(jnp.bfloat16)
    kx = key.astype(jnp.bfloat16)
    vx = value.astype(jnp.bfloat16)
    if T1p != T1:
        qx = jnp.pad(qx, ((0, 0), (0, T1p - T1), (0, 0)))
    wq, wk, wv, wo = (w.astype(jnp.bfloat16) for w in (wq, wk, wv, wo))
    bq, bk, bv, bo = (b.astype(jnp.float32) for b in (bq, bk, bv, bo))

    # Precomputed additive f32 mask (0 valid / finfo.min masked).  Kept at its
    # original (B, 1, T2) or (B, T1, T2) shape; broadcast happens in-kernel.
    min_value = float(jnp.finfo(jnp.float32).min)
    mask_add = jnp.where(mask == 0, min_value, 0.0).astype(jnp.float32)
    if mask_add.shape[1] == 1:
        mask_spec = pl.BlockSpec((1, 1, T2), lambda b, i: (b, 0, 0))
    else:
        if T1p != T1:
            mask_add = jnp.pad(mask_add, ((0, 0), (0, T1p - T1), (0, 0)),
                               constant_values=min_value)
        mask_spec = pl.BlockSpec((1, tq, T2), lambda b, i: (b, i, 0))

    kernel = functools.partial(mha_kernel, n_head=n_head, d_k=d_k)

    def call(single_buffer_weights):
        # Weight/bias blocks never change (index_map is constant) ->
        # single-buffering them saves resident VMEM at zero pipelining cost.
        wkw = dict(pipeline_mode=pl.Buffered(1)) if single_buffer_weights else {}
        w_spec = pl.BlockSpec((F, F), lambda b, i: (0, 0), **wkw)
        b_spec = pl.BlockSpec((1, F), lambda b, i: (0, 0), **wkw)

        grid_spec = pltpu.PrefetchScalarGridSpec(
            num_scalar_prefetch=0,
            grid=(B, nq),
            in_specs=[
                pl.BlockSpec((1, tq, F), lambda b, i: (b, i, 0)),   # query tile
                pl.BlockSpec((1, T2, F), lambda b, i: (b, 0, 0)),   # key (per batch)
                pl.BlockSpec((1, T2, F), lambda b, i: (b, 0, 0)),   # value (per batch)
                mask_spec,                                          # additive mask
                w_spec, b_spec,                                     # q proj
                w_spec, b_spec,                                     # k proj
                w_spec, b_spec,                                     # v proj
                w_spec, b_spec,                                     # out proj
            ],
            out_specs=pl.BlockSpec((1, tq, F), lambda b, i: (b, i, 0)),
            scratch_shapes=[pltpu.VMEM((T2, F), jnp.bfloat16),      # projected K
                            pltpu.VMEM((T2, F), jnp.bfloat16)],     # projected V
        )
        return pl.pallas_call(
            kernel,
            out_shape=jax.ShapeDtypeStruct((B, T1p, F), jnp.float32),
            grid_spec=grid_spec,
            compiler_params=pltpu.CompilerParams(
                # K/V projections cached in scratch at i == 0, so the query-tile
                # axis must run in order ("arbitrary"); batch stays parallel.
                dimension_semantics=("parallel", "arbitrary"),
                vmem_limit_bytes=vmem_limit,
            ),
        )(qx, kx, vx, mask_add, wq, bq, wk, bk, wv, bv, wo, bo)

    try:
        out = jax.block_until_ready(call(True))
    except Exception:
        # pl.Buffered(1) (single-buffered constant weights) unsupported on this
        # jax version/backend -> retry with default double-buffered specs.
        out = call(False)

    return out[:, :T1, :]


def reference_mha(query, key, value, mask, params, n_head):
    """Pure-JAX f32 reference matching the PyTorch forward exactly (eval mode)."""
    B, T1, F = query.shape
    T2 = key.shape[1]
    d_k = F // n_head
    wq, bq, wk, bk, wv, bv, wo, bo = params

    def lin(x, w, b):
        return x @ w + b[0]

    q = lin(query, wq, bq).reshape(B, T1, n_head, d_k).transpose(0, 2, 1, 3)
    k = lin(key, wk, bk).reshape(B, T2, n_head, d_k).transpose(0, 2, 1, 3)
    v = lin(value, wv, bv).reshape(B, T2, n_head, d_k).transpose(0, 2, 1, 3)

    scores = jnp.einsum("bhtd,bhsd->bhts", q, k) / math.sqrt(d_k)
    mask0 = (jnp.broadcast_to(mask, (B, T1, T2)) == 0)[:, None, :, :]
    scores = jnp.where(mask0, jnp.finfo(jnp.float32).min, scores)
    attn = jax.nn.softmax(scores, axis=-1)
    attn = jnp.where(mask0, 0.0, attn)
    x = jnp.einsum("bhts,bhsd->bhtd", attn, v)
    x = x.transpose(0, 2, 1, 3).reshape(B, T1, F)
    return lin(x, wo, bo)


def init_params(key, n_feat):
    """Deterministic init mimicking torch.nn.Linear defaults (uniform +/-1/sqrt(in))."""
    bound = 1.0 / math.sqrt(n_feat)
    keys = jax.random.split(key, 8)
    params = []
    for i in range(4):
        w = jax.random.uniform(keys[2 * i], (n_feat, n_feat),
                               minval=-bound, maxval=bound, dtype=jnp.float32)
        b = jax.random.uniform(keys[2 * i + 1], (1, n_feat),
                               minval=-bound, maxval=bound, dtype=jnp.float32)
        params.extend([w, b])
    return tuple(params)


if __name__ == "__main__":
    B, T1, T2, F, H = 3, 12, 8, 32, 4   # T1 not 8-aligned -> exercises padding

    root = jax.random.PRNGKey(0)
    k_q, k_k, k_v, k_p = jax.random.split(root, 4)

    query = jax.random.normal(k_q, (B, T1, F), dtype=jnp.float32)
    key = jax.random.normal(k_k, (B, T2, F), dtype=jnp.float32)
    value = jax.random.normal(k_v, (B, T2, F), dtype=jnp.float32)

    # espnet-style padding mask (B, 1, T2):
    # batch0 all valid, batch1 length 5, batch2 fully masked (length 0).
    lengths = jnp.array([T2, 5, 0])
    mask = (jnp.arange(T2)[None, None, :] < lengths[:, None, None]).astype(jnp.int32)

    params = init_params(k_p, F)

    out = multi_headed_attention(query, key, value, mask, params, H)
    out = jax.block_until_ready(out)

    # f32 reference; kernel matmuls run in bf16, so compare with a tolerance
    # that covers bf16 rounding + approx reciprocal.
    ref = reference_mha(query, key, value, mask, params, H)
    np.testing.assert_allclose(np.asarray(out), np.asarray(ref),
                               rtol=5e-2, atol=5e-2)

    print("KERNEL_OK")
</pallas_src>

<mosaic_0001>
module attributes {stable_mosaic.version = 11 : i64} {
  func.func @mha_kernel(%arg0: i32, %arg1: i32, %arg2: memref<1x16x32xbf16, #tpu.memory_space<vmem>>, %arg3: memref<1x8x32xbf16, #tpu.memory_space<vmem>>, %arg4: memref<1x8x32xbf16, #tpu.memory_space<vmem>>, %arg5: memref<1x1x8xf32, #tpu.memory_space<vmem>>, %arg6: memref<32x32xbf16, #tpu.memory_space<vmem>>, %arg7: memref<1x32xf32, #tpu.memory_space<vmem>>, %arg8: memref<32x32xbf16, #tpu.memory_space<vmem>>, %arg9: memref<1x32xf32, #tpu.memory_space<vmem>>, %arg10: memref<32x32xbf16, #tpu.memory_space<vmem>>, %arg11: memref<1x32xf32, #tpu.memory_space<vmem>>, %arg12: memref<32x32xbf16, #tpu.memory_space<vmem>>, %arg13: memref<1x32xf32, #tpu.memory_space<vmem>>, %arg14: memref<1x16x32xf32, #tpu.memory_space<vmem>>, %arg15: memref<8x32xbf16, #tpu.memory_space<vmem>>, %arg16: memref<8x32xbf16, #tpu.memory_space<vmem>>) attributes {dimension_semantics = [#tpu.dimension_semantics<parallel>, #tpu.dimension_semantics<arbitrary>], iteration_bounds = array<i64: 3, 1>, scalar_prefetch = 0 : i64, scratch_operands = 2 : i64, tpu.core_type = #tpu.core_type<tc>, window_params = [{transform_indices = @transform_0, window_bounds = array<i64: 1, 16, 32>}, {transform_indices = @transform_1, window_bounds = array<i64: 1, 8, 32>}, {transform_indices = @transform_2, window_bounds = array<i64: 1, 8, 32>}, {transform_indices = @transform_3, window_bounds = array<i64: 1, 1, 8>}, {pipeline_mode = #tpu.pipeline_mode<synchronous>, transform_indices = @transform_4, window_bounds = array<i64: 32, 32>}, {pipeline_mode = #tpu.pipeline_mode<synchronous>, transform_indices = @transform_5, window_bounds = array<i64: 1, 32>}, {pipeline_mode = #tpu.pipeline_mode<synchronous>, transform_indices = @transform_6, window_bounds = array<i64: 32, 32>}, {pipeline_mode = #tpu.pipeline_mode<synchronous>, transform_indices = @transform_7, window_bounds = array<i64: 1, 32>}, {pipeline_mode = #tpu.pipeline_mode<synchronous>, transform_indices = @transform_8, window_bounds = array<i64: 32, 32>}, {pipeline_mode = #tpu.pipeline_mode<synchronous>, transform_indices = @transform_9, window_bounds = array<i64: 1, 32>}, {pipeline_mode = #tpu.pipeline_mode<synchronous>, transform_indices = @transform_10, window_bounds = array<i64: 32, 32>}, {pipeline_mode = #tpu.pipeline_mode<synchronous>, transform_indices = @transform_11, window_bounds = array<i64: 1, 32>}, {transform_indices = @transform_12, window_bounds = array<i64: 1, 16, 32>}]} {
    %c0_i32 = arith.constant 0 : i32
    %0 = arith.cmpi eq, %arg1, %c0_i32 : i32
    %1 = arith.extui %0 : i1 to i32
    %c0_i32_0 = arith.constant 0 : i32
    %2 = arith.cmpi ne, %1, %c0_i32_0 : i32
    scf.if %2 {
      %c0_41 = arith.constant 0 : index
      %c0_42 = arith.constant 0 : index
      %c0_43 = arith.constant 0 : index
      %107 = vector.load %arg3[%c0_41, %c0_42, %c0_43] : memref<1x8x32xbf16, #tpu.memory_space<vmem>>, vector<1x8x32xbf16>
      %108 = vector.shape_cast %107 : vector<1x8x32xbf16> to vector<8x32xbf16>
      %c0_44 = arith.constant 0 : index
      %c0_45 = arith.constant 0 : index
      %c0_46 = arith.constant 0 : index
      %109 = vector.load %arg4[%c0_44, %c0_45, %c0_46] : memref<1x8x32xbf16, #tpu.memory_space<vmem>>, vector<1x8x32xbf16>
      %110 = vector.shape_cast %109 : vector<1x8x32xbf16> to vector<8x32xbf16>
      %c0_47 = arith.constant 0 : index
      %c0_48 = arith.constant 0 : index
      %111 = vector.load %arg8[%c0_47, %c0_48] : memref<32x32xbf16, #tpu.memory_space<vmem>>, vector<32x32xbf16>
      %cst_49 = arith.constant dense<0.000000e+00> : vector<8x32xf32>
      %112 = tpu.matmul %108, %111, %cst_49 {dimension_numbers = #tpu.dot_dimension_numbers<[1], [0], [0], [1], [0, 0, 1, 1], [], []>} : vector<8x32xbf16>, vector<32x32xbf16>, vector<8x32xf32> -> vector<8x32xf32>
      %c0_50 = arith.constant 0 : index
      %c0_51 = arith.constant 0 : index
      %113 = vector.load %arg9[%c0_50, %c0_51] : memref<1x32xf32, #tpu.memory_space<vmem>>, vector<1x32xf32>
      %114 = vector.broadcast %113 : vector<1x32xf32> to vector<8x32xf32>
      %115 = arith.addf %112, %114 : vector<8x32xf32>
      %116 = arith.truncf %115 : vector<8x32xf32> to vector<8x32xbf16>
      %c0_52 = arith.constant 0 : index
      %c0_53 = arith.constant 0 : index
      %117 = vector.load %arg15[%c0_52, %c0_53] : memref<8x32xbf16, #tpu.memory_space<vmem>>, vector<8x32xbf16>
      tpu.vector_store %arg15[%c0_52, %c0_53], %116 {strides = array<i32>} : memref<8x32xbf16, #tpu.memory_space<vmem>>, vector<8x32xbf16>,
      %c0_54 = arith.constant 0 : index
      %c0_55 = arith.constant 0 : index
      %118 = vector.load %arg10[%c0_54, %c0_55] : memref<32x32xbf16, #tpu.memory_space<vmem>>, vector<32x32xbf16>
      %cst_56 = arith.constant dense<0.000000e+00> : vector<8x32xf32>
      %119 = tpu.matmul %110, %118, %cst_56 {dimension_numbers = #tpu.dot_dimension_numbers<[1], [0], [0], [1], [0, 0, 1, 1], [], []>} : vector<8x32xbf16>, vector<32x32xbf16>, vector<8x32xf32> -> vector<8x32xf32>
      %c0_57 = arith.constant 0 : index
      %c0_58 = arith.constant 0 : index
      %120 = vector.load %arg11[%c0_57, %c0_58] : memref<1x32xf32, #tpu.memory_space<vmem>>, vector<1x32xf32>
      %121 = vector.broadcast %120 : vector<1x32xf32> to vector<8x32xf32>
      %122 = arith.addf %119, %121 : vector<8x32xf32>
      %123 = arith.truncf %122 : vector<8x32xf32> to vector<8x32xbf16>
      %c0_59 = arith.constant 0 : index
      %c0_60 = arith.constant 0 : index
      %124 = vector.load %arg16[%c0_59, %c0_60] : memref<8x32xbf16, #tpu.memory_space<vmem>>, vector<8x32xbf16>
      tpu.vector_store %arg16[%c0_59, %c0_60], %123 {strides = array<i32>} : memref<8x32xbf16, #tpu.memory_space<vmem>>, vector<8x32xbf16>,
    } else {
    }
    %c0 = arith.constant 0 : index
    %c0_1 = arith.constant 0 : index
    %c0_2 = arith.constant 0 : index
    %3 = vector.load %arg2[%c0, %c0_1, %c0_2] : memref<1x16x32xbf16, #tpu.memory_space<vmem>>, vector<1x16x32xbf16>
    %4 = vector.shape_cast %3 : vector<1x16x32xbf16> to vector<16x32xbf16>
    %c0_3 = arith.constant 0 : index
    %c0_4 = arith.constant 0 : index
    %5 = vector.load %arg6[%c0_3, %c0_4] : memref<32x32xbf16, #tpu.memory_space<vmem>>, vector<32x32xbf16>
    %cst = arith.constant dense<0.000000e+00> : vector<16x32xf32>
    %6 = tpu.matmul %4, %5, %cst {dimension_numbers = #tpu.dot_dimension_numbers<[1], [0], [0], [1], [0, 0, 1, 1], [], []>} : vector<16x32xbf16>, vector<32x32xbf16>, vector<16x32xf32> -> vector<16x32xf32>
    %c0_5 = arith.constant 0 : index
    %c0_6 = arith.constant 0 : index
    %7 = vector.load %arg7[%c0_5, %c0_6] : memref<1x32xf32, #tpu.memory_space<vmem>>, vector<1x32xf32>
    %8 = vector.broadcast %7 : vector<1x32xf32> to vector<16x32xf32>
    %9 = arith.addf %6, %8 : vector<16x32xf32>
    %cst_7 = arith.constant 0.353553385 : f32
    %10 = vector.broadcast %cst_7 : f32 to vector<16x32xf32>
    %11 = arith.mulf %9, %10 : vector<16x32xf32>
    %12 = arith.truncf %11 : vector<16x32xf32> to vector<16x32xbf16>
    %c0_8 = arith.constant 0 : index
    %c0_9 = arith.constant 0 : index
    %13 = vector.load %arg15[%c0_8, %c0_9] : memref<8x32xbf16, #tpu.memory_space<vmem>>, vector<8x32xbf16>
    %c0_10 = arith.constant 0 : index
    %c0_11 = arith.constant 0 : index
    %14 = vector.load %arg16[%c0_10, %c0_11] : memref<8x32xbf16, #tpu.memory_space<vmem>>, vector<8x32xbf16>
    %c0_12 = arith.constant 0 : index
    %c0_13 = arith.constant 0 : index
    %15 = vector.load %arg12[%c0_12, %c0_13] : memref<32x32xbf16, #tpu.memory_space<vmem>>, vector<32x32xbf16>
    %c0_14 = arith.constant 0 : index
    %c0_15 = arith.constant 0 : index
    %c0_16 = arith.constant 0 : index
    %16 = vector.load %arg5[%c0_14, %c0_15, %c0_16] : memref<1x1x8xf32, #tpu.memory_space<vmem>>, vector<1x1x8xf32>
    %17 = vector.shape_cast %16 : vector<1x1x8xf32> to vector<1x8xf32>
    %cst_17 = arith.constant dense<0xFF800000> : vector<1xf32>
    %18 = vector.multi_reduction <maximumf>, %17, %cst_17 [1] : vector<1x8xf32> to vector<1xf32>
    %19 = vector.shape_cast %18 : vector<1xf32> to vector<1x1xf32>
    %cst_18 = arith.constant 0.000000e+00 : f32
    %20 = vector.broadcast %cst_18 : f32 to vector<1x1xf32>
    %21 = arith.cmpf oeq, %19, %20 : vector<1x1xf32>
    %22 = arith.extui %21 : vector<1x1xi1> to vector<1x1xi32>
    %23 = arith.sitofp %22 : vector<1x1xi32> to vector<1x1xf32>
    %24 = vector.extract_strided_slice %12 {offsets = [0, 0], sizes = [16, 8], strides = [1, 1]} : vector<16x32xbf16> to vector<16x8xbf16>
    %25 = vector.extract_strided_slice %13 {offsets = [0, 0], sizes = [8, 8], strides = [1, 1]} : vector<8x32xbf16> to vector<8x8xbf16>
    %26 = vector.extract_strided_slice %14 {offsets = [0, 0], sizes = [8, 8], strides = [1, 1]} : vector<8x32xbf16> to vector<8x8xbf16>
    %cst_19 = arith.constant dense<0.000000e+00> : vector<16x8xf32>
    %27 = tpu.matmul %24, %25, %cst_19 {dimension_numbers = #tpu.dot_dimension_numbers<[1], [1], [0], [0], [0, 0, 1, 0], [], []>} : vector<16x8xbf16>, vector<8x8xbf16>, vector<16x8xf32> -> vector<16x8xf32>
    %28 = vector.broadcast %17 : vector<1x8xf32> to vector<16x8xf32>
    %29 = arith.addf %27, %28 : vector<16x8xf32>
    %cst_20 = arith.constant dense<0xFF800000> : vector<16xf32>
    %30 = vector.multi_reduction <maximumf>, %29, %cst_20 [1] : vector<16x8xf32> to vector<16xf32>
    %31 = vector.shape_cast %30 : vector<16xf32> to vector<16x1xf32>
    %32 = vector.broadcast %31 : vector<16x1xf32> to vector<16x8xf32>
    %33 = arith.subf %29, %32 : vector<16x8xf32>
    %34 = math.exp %33 : vector<16x8xf32>
    %cst_21 = arith.constant dense<0.000000e+00> : vector<16xf32>
    %35 = vector.multi_reduction <add>, %34, %cst_21 [1] : vector<16x8xf32> to vector<16xf32>
    %36 = vector.shape_cast %35 : vector<16xf32> to vector<16x1xf32>
    %37 = tpu.reciprocal %36 {approx = true} : vector<16x1xf32> -> vector<16x1xf32>
    %38 = vector.broadcast %37 : vector<16x1xf32> to vector<16x8xf32>
    %39 = arith.mulf %34, %38 : vector<16x8xf32>
    %40 = arith.truncf %39 : vector<16x8xf32> to vector<16x8xbf16>
    %cst_22 = arith.constant dense<0.000000e+00> : vector<16x8xf32>
    %41 = tpu.matmul %40, %26, %cst_22 {dimension_numbers = #tpu.dot_dimension_numbers<[1], [0], [0], [1], [0, 0, 1, 1], [], []>} : vector<16x8xbf16>, vector<8x8xbf16>, vector<16x8xf32> -> vector<16x8xf32>
    %42 = vector.extract_strided_slice %12 {offsets = [0, 8], sizes = [16, 8], strides = [1, 1]} : vector<16x32xbf16> to vector<16x8xbf16>
    %43 = vector.extract_strided_slice %13 {offsets = [0, 8], sizes = [8, 8], strides = [1, 1]} : vector<8x32xbf16> to vector<8x8xbf16>
    %44 = vector.extract_strided_slice %14 {offsets = [0, 8], sizes = [8, 8], strides = [1, 1]} : vector<8x32xbf16> to vector<8x8xbf16>
    %cst_23 = arith.constant dense<0.000000e+00> : vector<16x8xf32>
    %45 = tpu.matmul %42, %43, %cst_23 {dimension_numbers = #tpu.dot_dimension_numbers<[1], [1], [0], [0], [0, 0, 1, 0], [], []>} : vector<16x8xbf16>, vector<8x8xbf16>, vector<16x8xf32> -> vector<16x8xf32>
    %46 = vector.broadcast %17 : vector<1x8xf32> to vector<16x8xf32>
    %47 = arith.addf %45, %46 : vector<16x8xf32>
    %cst_24 = arith.constant dense<0xFF800000> : vector<16xf32>
    %48 = vector.multi_reduction <maximumf>, %47, %cst_24 [1] : vector<16x8xf32> to vector<16xf32>
    %49 = vector.shape_cast %48 : vector<16xf32> to vector<16x1xf32>
    %50 = vector.broadcast %49 : vector<16x1xf32> to vector<16x8xf32>
    %51 = arith.subf %47, %50 : vector<16x8xf32>
    %52 = math.exp %51 : vector<16x8xf32>
    %cst_25 = arith.constant dense<0.000000e+00> : vector<16xf32>
    %53 = vector.multi_reduction <add>, %52, %cst_25 [1] : vector<16x8xf32> to vector<16xf32>
    %54 = vector.shape_cast %53 : vector<16xf32> to vector<16x1xf32>
    %55 = tpu.reciprocal %54 {approx = true} : vector<16x1xf32> -> vector<16x1xf32>
    %56 = vector.broadcast %55 : vector<16x1xf32> to vector<16x8xf32>
    %57 = arith.mulf %52, %56 : vector<16x8xf32>
    %58 = arith.truncf %57 : vector<16x8xf32> to vector<16x8xbf16>
    %cst_26 = arith.constant dense<0.000000e+00> : vector<16x8xf32>
    %59 = tpu.matmul %58, %44, %cst_26 {dimension_numbers = #tpu.dot_dimension_numbers<[1], [0], [0], [1], [0, 0, 1, 1], [], []>} : vector<16x8xbf16>, vector<8x8xbf16>, vector<16x8xf32> -> vector<16x8xf32>
    %60 = vector.extract_strided_slice %12 {offsets = [0, 16], sizes = [16, 8], strides = [1, 1]} : vector<16x32xbf16> to vector<16x8xbf16>
    %61 = vector.extract_strided_slice %13 {offsets = [0, 16], sizes = [8, 8], strides = [1, 1]} : vector<8x32xbf16> to vector<8x8xbf16>
    %62 = vector.extract_strided_slice %14 {offsets = [0, 16], sizes = [8, 8], strides = [1, 1]} : vector<8x32xbf16> to vector<8x8xbf16>
    %cst_27 = arith.constant dense<0.000000e+00> : vector<16x8xf32>
    %63 = tpu.matmul %60, %61, %cst_27 {dimension_numbers = #tpu.dot_dimension_numbers<[1], [1], [0], [0], [0, 0, 1, 0], [], []>} : vector<16x8xbf16>, vector<8x8xbf16>, vector<16x8xf32> -> vector<16x8xf32>
    %64 = vector.broadcast %17 : vector<1x8xf32> to vector<16x8xf32>
    %65 = arith.addf %63, %64 : vector<16x8xf32>
    %cst_28 = arith.constant dense<0xFF800000> : vector<16xf32>
    %66 = vector.multi_reduction <maximumf>, %65, %cst_28 [1] : vector<16x8xf32> to vector<16xf32>
    %67 = vector.shape_cast %66 : vector<16xf32> to vector<16x1xf32>
    %68 = vector.broadcast %67 : vector<16x1xf32> to vector<16x8xf32>
    %69 = arith.subf %65, %68 : vector<16x8xf32>
    %70 = math.exp %69 : vector<16x8xf32>
    %cst_29 = arith.constant dense<0.000000e+00> : vector<16xf32>
    %71 = vector.multi_reduction <add>, %70, %cst_29 [1] : vector<16x8xf32> to vector<16xf32>
    %72 = vector.shape_cast %71 : vector<16xf32> to vector<16x1xf32>
    %73 = tpu.reciprocal %72 {approx = true} : vector<16x1xf32> -> vector<16x1xf32>
    %74 = vector.broadcast %73 : vector<16x1xf32> to vector<16x8xf32>
    %75 = arith.mulf %70, %74 : vector<16x8xf32>
    %76 = arith.truncf %75 : vector<16x8xf32> to vector<16x8xbf16>
    %cst_30 = arith.constant dense<0.000000e+00> : vector<16x8xf32>
    %77 = tpu.matmul %76, %62, %cst_30 {dimension_numbers = #tpu.dot_dimension_numbers<[1], [0], [0], [1], [0, 0, 1, 1], [], []>} : vector<16x8xbf16>, vector<8x8xbf16>, vector<16x8xf32> -> vector<16x8xf32>
    %78 = vector.extract_strided_slice %12 {offsets = [0, 24], sizes = [16, 8], strides = [1, 1]} : vector<16x32xbf16> to vector<16x8xbf16>
    %79 = vector.extract_strided_slice %13 {offsets = [0, 24], sizes = [8, 8], strides = [1, 1]} : vector<8x32xbf16> to vector<8x8xbf16>
    %80 = vector.extract_strided_slice %14 {offsets = [0, 24], sizes = [8, 8], strides = [1, 1]} : vector<8x32xbf16> to vector<8x8xbf16>
    %cst_31 = arith.constant dense<0.000000e+00> : vector<16x8xf32>
    %81 = tpu.matmul %78, %79, %cst_31 {dimension_numbers = #tpu.dot_dimension_numbers<[1], [1], [0], [0], [0, 0, 1, 0], [], []>} : vector<16x8xbf16>, vector<8x8xbf16>, vector<16x8xf32> -> vector<16x8xf32>
    %82 = vector.broadcast %17 : vector<1x8xf32> to vector<16x8xf32>
    %83 = arith.addf %81, %82 : vector<16x8xf32>
    %cst_32 = arith.constant dense<0xFF800000> : vector<16xf32>
    %84 = vector.multi_reduction <maximumf>, %83, %cst_32 [1] : vector<16x8xf32> to vector<16xf32>
    %85 = vector.shape_cast %84 : vector<16xf32> to vector<16x1xf32>
    %86 = vector.broadcast %85 : vector<16x1xf32> to vector<16x8xf32>
    %87 = arith.subf %83, %86 : vector<16x8xf32>
    %88 = math.exp %87 : vector<16x8xf32>
    %cst_33 = arith.constant dense<0.000000e+00> : vector<16xf32>
    %89 = vector.multi_reduction <add>, %88, %cst_33 [1] : vector<16x8xf32> to vector<16xf32>
    %90 = vector.shape_cast %89 : vector<16xf32> to vector<16x1xf32>
    %91 = tpu.reciprocal %90 {approx = true} : vector<16x1xf32> -> vector<16x1xf32>
    %92 = vector.broadcast %91 : vector<16x1xf32> to vector<16x8xf32>
    %93 = arith.mulf %88, %92 : vector<16x8xf32>
    %94 = arith.truncf %93 : vector<16x8xf32> to vector<16x8xbf16>
    %cst_34 = arith.constant dense<0.000000e+00> : vector<16x8xf32>
    %95 = tpu.matmul %94, %80, %cst_34 {dimension_numbers = #tpu.dot_dimension_numbers<[1], [0], [0], [1], [0, 0, 1, 1], [], []>} : vector<16x8xbf16>, vector<8x8xbf16>, vector<16x8xf32> -> vector<16x8xf32>
    %96 = tpu.concatenate %41, %59, %77, %95 in 1 : vector<16x8xf32>, vector<16x8xf32>, vector<16x8xf32>, vector<16x8xf32> -> vector<16x32xf32>
    %97 = arith.truncf %96 : vector<16x32xf32> to vector<16x32xbf16>
    %cst_35 = arith.constant dense<0.000000e+00> : vector<16x32xf32>
    %98 = tpu.matmul %97, %15, %cst_35 {dimension_numbers = #tpu.dot_dimension_numbers<[1], [0], [0], [1], [0, 0, 1, 1], [], []>} : vector<16x32xbf16>, vector<32x32xbf16>, vector<16x32xf32> -> vector<16x32xf32>
    %99 = vector.broadcast %23 : vector<1x1xf32> to vector<16x32xf32>
    %100 = arith.mulf %98, %99 : vector<16x32xf32>
    %c0_36 = arith.constant 0 : index
    %c0_37 = arith.constant 0 : index
    %101 = vector.load %arg13[%c0_36, %c0_37] : memref<1x32xf32, #tpu.memory_space<vmem>>, vector<1x32xf32>
    %102 = vector.broadcast %101 : vector<1x32xf32> to vector<16x32xf32>
    %103 = arith.addf %100, %102 : vector<16x32xf32>
    %c0_38 = arith.constant 0 : index
    %c0_39 = arith.constant 0 : index
    %c0_40 = arith.constant 0 : index
    %104 = vector.load %arg14[%c0_38, %c0_39, %c0_40] : memref<1x16x32xf32, #tpu.memory_space<vmem>>, vector<1x16x32xf32>
    %105 = vector.shape_cast %104 : vector<1x16x32xf32> to vector<16x32xf32>
    %106 = vector.shape_cast %103 : vector<16x32xf32> to vector<1x16x32xf32>
    tpu.vector_store %arg14[%c0_38, %c0_39, %c0_40], %106 {strides = array<i32>} : memref<1x16x32xf32, #tpu.memory_space<vmem>>, vector<1x16x32xf32>,
    return
  }
  func.func @transform_0(%arg0: i32, %arg1: i32) -> (i32, i32, i32) {
    %c0_i32 = arith.constant 0 : i32
    %c0_i32_0 = arith.constant 0 : i32
    return %arg0, %arg1, %c0_i32 : i32, i32, i32
  }
  func.func @transform_1(%arg0: i32, %arg1: i32) -> (i32, i32, i32) {
    %c0_i32 = arith.constant 0 : i32
    %c0_i32_0 = arith.constant 0 : i32
    %c0_i32_1 = arith.constant 0 : i32
    return %arg0, %c0_i32, %c0_i32_0 : i32, i32, i32
  }
  func.func @transform_2(%arg0: i32, %arg1: i32) -> (i32, i32, i32) {
    %c0_i32 = arith.constant 0 : i32
    %c0_i32_0 = arith.constant 0 : i32
    %c0_i32_1 = arith.constant 0 : i32
    return %arg0, %c0_i32, %c0_i32_0 : i32, i32, i32
  }
  func.func @transform_3(%arg0: i32, %arg1: i32) -> (i32, i32, i32) {
    %c0_i32 = arith.constant 0 : i32
    %c0_i32_0 = arith.constant 0 : i32
    %c0_i32_1 = arith.constant 0 : i32
    return %arg0, %c0_i32, %c0_i32_0 : i32, i32, i32
  }
  func.func @transform_4(%arg0: i32, %arg1: i32) -> (i32, i32) {
    %c0_i32 = arith.constant 0 : i32
    %c0_i32_0 = arith.constant 0 : i32
    %c0_i32_1 = arith.constant 0 : i32
    return %c0_i32, %c0_i32_0 : i32, i32
  }
  func.func @transform_5(%arg0: i32, %arg1: i32) -> (i32, i32) {
    %c0_i32 = arith.constant 0 : i32
    %c0_i32_0 = arith.constant 0 : i32
    %c0_i32_1 = arith.constant 0 : i32
    return %c0_i32, %c0_i32_0 : i32, i32
  }
  func.func @transform_6(%arg0: i32, %arg1: i32) -> (i32, i32) {
    %c0_i32 = arith.constant 0 : i32
    %c0_i32_0 = arith.constant 0 : i32
    %c0_i32_1 = arith.constant 0 : i32
    return %c0_i32, %c0_i32_0 : i32, i32
  }
  func.func @transform_7(%arg0: i32, %arg1: i32) -> (i32, i32) {
    %c0_i32 = arith.constant 0 : i32
    %c0_i32_0 = arith.constant 0 : i32
    %c0_i32_1 = arith.constant 0 : i32
    return %c0_i32, %c0_i32_0 : i32, i32
  }
  func.func @transform_8(%arg0: i32, %arg1: i32) -> (i32, i32) {
    %c0_i32 = arith.constant 0 : i32
    %c0_i32_0 = arith.constant 0 : i32
    %c0_i32_1 = arith.constant 0 : i32
    return %c0_i32, %c0_i32_0 : i32, i32
  }
  func.func @transform_9(%arg0: i32, %arg1: i32) -> (i32, i32) {
    %c0_i32 = arith.constant 0 : i32
    %c0_i32_0 = arith.constant 0 : i32
    %c0_i32_1 = arith.constant 0 : i32
    return %c0_i32, %c0_i32_0 : i32, i32
  }
  func.func @transform_10(%arg0: i32, %arg1: i32) -> (i32, i32) {
    %c0_i32 = arith.constant 0 : i32
    %c0_i32_0 = arith.constant 0 : i32
    %c0_i32_1 = arith.constant 0 : i32
    return %c0_i32, %c0_i32_0 : i32, i32
  }
  func.func @transform_11(%arg0: i32, %arg1: i32) -> (i32, i32) {
    %c0_i32 = arith.constant 0 : i32
    %c0_i32_0 = arith.constant 0 : i32
    %c0_i32_1 = arith.constant 0 : i32
    return %c0_i32, %c0_i32_0 : i32, i32
  }
  func.func @transform_12(%arg0: i32, %arg1: i32) -> (i32, i32, i32) {
    %c0_i32 = arith.constant 0 : i32
    %c0_i32_0 = arith.constant 0 : i32
    return %arg0, %arg1, %c0_i32 : i32, i32, i32
  }
}

module attributes {stable_mosaic.version = 11 : i64} {
  func.func @mha_kernel(%arg0: i32, %arg1: i32, %arg2: memref<1x16x32xbf16, #tpu.memory_space<vmem>>, %arg3: memref<1x8x32xbf16, #tpu.memory_space<vmem>>, %arg4: memref<1x8x32xbf16, #tpu.memory_space<vmem>>, %arg5: memref<1x1x8xf32, #tpu.memory_space<vmem>>, %arg6: memref<32x32xbf16, #tpu.memory_space<vmem>>, %arg7: memref<1x32xf32, #tpu.memory_space<vmem>>, %arg8: memref<32x32xbf16, #tpu.memory_space<vmem>>, %arg9: memref<1x32xf32, #tpu.memory_space<vmem>>, %arg10: memref<32x32xbf16, #tpu.memory_space<vmem>>, %arg11: memref<1x32xf32, #tpu.memory_space<vmem>>, %arg12: memref<32x32xbf16, #tpu.memory_space<vmem>>, %arg13: memref<1x32xf32, #tpu.memory_space<vmem>>, %arg14: memref<1x16x32xf32, #tpu.memory_space<vmem>>, %arg15: memref<8x32xbf16, #tpu.memory_space<vmem>>, %arg16: memref<8x32xbf16, #tpu.memory_space<vmem>>) attributes {dimension_semantics = [#tpu.dimension_semantics<parallel>, #tpu.dimension_semantics<arbitrary>], iteration_bounds = array<i64: 3, 1>, scalar_prefetch = 0 : i64, scratch_operands = 2 : i64, tpu.core_type = #tpu.core_type<tc>, window_params = [{transform_indices = @transform_0, window_bounds = array<i64: 1, 16, 32>}, {transform_indices = @transform_1, window_bounds = array<i64: 1, 8, 32>}, {transform_indices = @transform_2, window_bounds = array<i64: 1, 8, 32>}, {transform_indices = @transform_3, window_bounds = array<i64: 1, 1, 8>}, {pipeline_mode = #tpu.pipeline_mode<synchronous>, transform_indices = @transform_4, window_bounds = array<i64: 32, 32>}, {pipeline_mode = #tpu.pipeline_mode<synchronous>, transform_indices = @transform_5, window_bounds = array<i64: 1, 32>}, {pipeline_mode = #tpu.pipeline_mode<synchronous>, transform_indices = @transform_6, window_bounds = array<i64: 32, 32>}, {pipeline_mode = #tpu.pipeline_mode<synchronous>, transform_indices = @transform_7, window_bounds = array<i64: 1, 32>}, {pipeline_mode = #tpu.pipeline_mode<synchronous>, transform_indices = @transform_8, window_bounds = array<i64: 32, 32>}, {pipeline_mode = #tpu.pipeline_mode<synchronous>, transform_indices = @transform_9, window_bounds = array<i64: 1, 32>}, {pipeline_mode = #tpu.pipeline_mode<synchronous>, transform_indices = @transform_10, window_bounds = array<i64: 32, 32>}, {pipeline_mode = #tpu.pipeline_mode<synchronous>, transform_indices = @transform_11, window_bounds = array<i64: 1, 32>}, {transform_indices = @transform_12, window_bounds = array<i64: 1, 16, 32>}]} {
    %c0_i32 = arith.constant 0 : i32
    %0 = arith.cmpi eq, %arg1, %c0_i32 : i32
    %1 = arith.extui %0 : i1 to i32
    %c0_i32_0 = arith.constant 0 : i32
    %2 = arith.cmpi ne, %1, %c0_i32_0 : i32
    scf.if %2 {
      %c0_41 = arith.constant 0 : index
      %c0_42 = arith.constant 0 : index
      %c0_43 = arith.constant 0 : index
      %107 = vector.load %arg3[%c0_41, %c0_42, %c0_43] : memref<1x8x32xbf16, #tpu.memory_space<vmem>>, vector<1x8x32xbf16>
      %108 = vector.shape_cast %107 : vector<1x8x32xbf16> to vector<8x32xbf16>
      %c0_44 = arith.constant 0 : index
      %c0_45 = arith.constant 0 : index
      %c0_46 = arith.constant 0 : index
      %109 = vector.load %arg4[%c0_44, %c0_45, %c0_46] : memref<1x8x32xbf16, #tpu.memory_space<vmem>>, vector<1x8x32xbf16>
      %110 = vector.shape_cast %109 : vector<1x8x32xbf16> to vector<8x32xbf16>
      %c0_47 = arith.constant 0 : index
      %c0_48 = arith.constant 0 : index
      %111 = vector.load %arg8[%c0_47, %c0_48] : memref<32x32xbf16, #tpu.memory_space<vmem>>, vector<32x32xbf16>
      %cst_49 = arith.constant dense<0.000000e+00> : vector<8x32xf32>
      %112 = tpu.matmul %108, %111, %cst_49 {dimension_numbers = #tpu.dot_dimension_numbers<[1], [0], [0], [1], [0, 0, 1, 1], [], []>} : vector<8x32xbf16>, vector<32x32xbf16>, vector<8x32xf32> -> vector<8x32xf32>
      %c0_50 = arith.constant 0 : index
      %c0_51 = arith.constant 0 : index
      %113 = vector.load %arg9[%c0_50, %c0_51] : memref<1x32xf32, #tpu.memory_space<vmem>>, vector<1x32xf32>
      %114 = vector.broadcast %113 : vector<1x32xf32> to vector<8x32xf32>
      %115 = arith.addf %112, %114 : vector<8x32xf32>
      %116 = arith.truncf %115 : vector<8x32xf32> to vector<8x32xbf16>
      %c0_52 = arith.constant 0 : index
      %c0_53 = arith.constant 0 : index
      %117 = vector.load %arg15[%c0_52, %c0_53] : memref<8x32xbf16, #tpu.memory_space<vmem>>, vector<8x32xbf16>
      tpu.vector_store %arg15[%c0_52, %c0_53], %116 {strides = array<i32>} : memref<8x32xbf16, #tpu.memory_space<vmem>>, vector<8x32xbf16>,
      %c0_54 = arith.constant 0 : index
      %c0_55 = arith.constant 0 : index
      %118 = vector.load %arg10[%c0_54, %c0_55] : memref<32x32xbf16, #tpu.memory_space<vmem>>, vector<32x32xbf16>
      %cst_56 = arith.constant dense<0.000000e+00> : vector<8x32xf32>
      %119 = tpu.matmul %110, %118, %cst_56 {dimension_numbers = #tpu.dot_dimension_numbers<[1], [0], [0], [1], [0, 0, 1, 1], [], []>} : vector<8x32xbf16>, vector<32x32xbf16>, vector<8x32xf32> -> vector<8x32xf32>
      %c0_57 = arith.constant 0 : index
      %c0_58 = arith.constant 0 : index
      %120 = vector.load %arg11[%c0_57, %c0_58] : memref<1x32xf32, #tpu.memory_space<vmem>>, vector<1x32xf32>
      %121 = vector.broadcast %120 : vector<1x32xf32> to vector<8x32xf32>
      %122 = arith.addf %119, %121 : vector<8x32xf32>
      %123 = arith.truncf %122 : vector<8x32xf32> to vector<8x32xbf16>
      %c0_59 = arith.constant 0 : index
      %c0_60 = arith.constant 0 : index
      %124 = vector.load %arg16[%c0_59, %c0_60] : memref<8x32xbf16, #tpu.memory_space<vmem>>, vector<8x32xbf16>
      tpu.vector_store %arg16[%c0_59, %c0_60], %123 {strides = array<i32>} : memref<8x32xbf16, #tpu.memory_space<vmem>>, vector<8x32xbf16>,
    } else {
    }
    %c0 = arith.constant 0 : index
    %c0_1 = arith.constant 0 : index
    %c0_2 = arith.constant 0 : index
    %3 = vector.load %arg2[%c0, %c0_1, %c0_2] : memref<1x16x32xbf16, #tpu.memory_space<vmem>>, vector<1x16x32xbf16>
    %4 = vector.shape_cast %3 : vector<1x16x32xbf16> to vector<16x32xbf16>
    %c0_3 = arith.constant 0 : index
    %c0_4 = arith.constant 0 : index
    %5 = vector.load %arg6[%c0_3, %c0_4] : memref<32x32xbf16, #tpu.memory_space<vmem>>, vector<32x32xbf16>
    %cst = arith.constant dense<0.000000e+00> : vector<16x32xf32>
    %6 = tpu.matmul %4, %5, %cst {dimension_numbers = #tpu.dot_dimension_numbers<[1], [0], [0], [1], [0, 0, 1, 1], [], []>} : vector<16x32xbf16>, vector<32x32xbf16>, vector<16x32xf32> -> vector<16x32xf32>
    %c0_5 = arith.constant 0 : index
    %c0_6 = arith.constant 0 : index
    %7 = vector.load %arg7[%c0_5, %c0_6] : memref<1x32xf32, #tpu.memory_space<vmem>>, vector<1x32xf32>
    %8 = vector.broadcast %7 : vector<1x32xf32> to vector<16x32xf32>
    %9 = arith.addf %6, %8 : vector<16x32xf32>
    %cst_7 = arith.constant 0.353553385 : f32
    %10 = vector.broadcast %cst_7 : f32 to vector<16x32xf32>
    %11 = arith.mulf %9, %10 : vector<16x32xf32>
    %12 = arith.truncf %11 : vector<16x32xf32> to vector<16x32xbf16>
    %c0_8 = arith.constant 0 : index
    %c0_9 = arith.constant 0 : index
    %13 = vector.load %arg15[%c0_8, %c0_9] : memref<8x32xbf16, #tpu.memory_space<vmem>>, vector<8x32xbf16>
    %c0_10 = arith.constant 0 : index
    %c0_11 = arith.constant 0 : index
    %14 = vector.load %arg16[%c0_10, %c0_11] : memref<8x32xbf16, #tpu.memory_space<vmem>>, vector<8x32xbf16>
    %c0_12 = arith.constant 0 : index
    %c0_13 = arith.constant 0 : index
    %15 = vector.load %arg12[%c0_12, %c0_13] : memref<32x32xbf16, #tpu.memory_space<vmem>>, vector<32x32xbf16>
    %c0_14 = arith.constant 0 : index
    %c0_15 = arith.constant 0 : index
    %c0_16 = arith.constant 0 : index
    %16 = vector.load %arg5[%c0_14, %c0_15, %c0_16] : memref<1x1x8xf32, #tpu.memory_space<vmem>>, vector<1x1x8xf32>
    %17 = vector.shape_cast %16 : vector<1x1x8xf32> to vector<1x8xf32>
    %cst_17 = arith.constant dense<0xFF800000> : vector<1xf32>
    %18 = vector.multi_reduction <maximumf>, %17, %cst_17 [1] : vector<1x8xf32> to vector<1xf32>
    %19 = vector.shape_cast %18 : vector<1xf32> to vector<1x1xf32>
    %cst_18 = arith.constant 0.000000e+00 : f32
    %20 = vector.broadcast %cst_18 : f32 to vector<1x1xf32>
    %21 = arith.cmpf oeq, %19, %20 : vector<1x1xf32>
    %22 = arith.extui %21 : vector<1x1xi1> to vector<1x1xi32>
    %23 = arith.sitofp %22 : vector<1x1xi32> to vector<1x1xf32>
    %24 = vector.extract_strided_slice %12 {offsets = [0, 0], sizes = [16, 8], strides = [1, 1]} : vector<16x32xbf16> to vector<16x8xbf16>
    %25 = vector.extract_strided_slice %13 {offsets = [0, 0], sizes = [8, 8], strides = [1, 1]} : vector<8x32xbf16> to vector<8x8xbf16>
    %26 = vector.extract_strided_slice %14 {offsets = [0, 0], sizes = [8, 8], strides = [1, 1]} : vector<8x32xbf16> to vector<8x8xbf16>
    %cst_19 = arith.constant dense<0.000000e+00> : vector<16x8xf32>
    %27 = tpu.matmul %24, %25, %cst_19 {dimension_numbers = #tpu.dot_dimension_numbers<[1], [1], [0], [0], [0, 0, 1, 0], [], []>} : vector<16x8xbf16>, vector<8x8xbf16>, vector<16x8xf32> -> vector<16x8xf32>
    %28 = vector.broadcast %17 : vector<1x8xf32> to vector<16x8xf32>
    %29 = arith.addf %27, %28 : vector<16x8xf32>
    %cst_20 = arith.constant dense<0xFF800000> : vector<16xf32>
    %30 = vector.multi_reduction <maximumf>, %29, %cst_20 [1] : vector<16x8xf32> to vector<16xf32>
    %31 = vector.shape_cast %30 : vector<16xf32> to vector<16x1xf32>
    %32 = vector.broadcast %31 : vector<16x1xf32> to vector<16x8xf32>
    %33 = arith.subf %29, %32 : vector<16x8xf32>
    %34 = math.exp %33 : vector<16x8xf32>
    %cst_21 = arith.constant dense<0.000000e+00> : vector<16xf32>
    %35 = vector.multi_reduction <add>, %34, %cst_21 [1] : vector<16x8xf32> to vector<16xf32>
    %36 = vector.shape_cast %35 : vector<16xf32> to vector<16x1xf32>
    %37 = tpu.reciprocal %36 {approx = true} : vector<16x1xf32> -> vector<16x1xf32>
    %38 = vector.broadcast %37 : vector<16x1xf32> to vector<16x8xf32>
    %39 = arith.mulf %34, %38 : vector<16x8xf32>
    %40 = arith.truncf %39 : vector<16x8xf32> to vector<16x8xbf16>
    %cst_22 = arith.constant dense<0.000000e+00> : vector<16x8xf32>
    %41 = tpu.matmul %40, %26, %cst_22 {dimension_numbers = #tpu.dot_dimension_numbers<[1], [0], [0], [1], [0, 0, 1, 1], [], []>} : vector<16x8xbf16>, vector<8x8xbf16>, vector<16x8xf32> -> vector<16x8xf32>
    %42 = vector.extract_strided_slice %12 {offsets = [0, 8], sizes = [16, 8], strides = [1, 1]} : vector<16x32xbf16> to vector<16x8xbf16>
    %43 = vector.extract_strided_slice %13 {offsets = [0, 8], sizes = [8, 8], strides = [1, 1]} : vector<8x32xbf16> to vector<8x8xbf16>
    %44 = vector.extract_strided_slice %14 {offsets = [0, 8], sizes = [8, 8], strides = [1, 1]} : vector<8x32xbf16> to vector<8x8xbf16>
    %cst_23 = arith.constant dense<0.000000e+00> : vector<16x8xf32>
    %45 = tpu.matmul %42, %43, %cst_23 {dimension_numbers = #tpu.dot_dimension_numbers<[1], [1], [0], [0], [0, 0, 1, 0], [], []>} : vector<16x8xbf16>, vector<8x8xbf16>, vector<16x8xf32> -> vector<16x8xf32>
    %46 = vector.broadcast %17 : vector<1x8xf32> to vector<16x8xf32>
    %47 = arith.addf %45, %46 : vector<16x8xf32>
    %cst_24 = arith.constant dense<0xFF800000> : vector<16xf32>
    %48 = vector.multi_reduction <maximumf>, %47, %cst_24 [1] : vector<16x8xf32> to vector<16xf32>
    %49 = vector.shape_cast %48 : vector<16xf32> to vector<16x1xf32>
    %50 = vector.broadcast %49 : vector<16x1xf32> to vector<16x8xf32>
    %51 = arith.subf %47, %50 : vector<16x8xf32>
    %52 = math.exp %51 : vector<16x8xf32>
    %cst_25 = arith.constant dense<0.000000e+00> : vector<16xf32>
    %53 = vector.multi_reduction <add>, %52, %cst_25 [1] : vector<16x8xf32> to vector<16xf32>
    %54 = vector.shape_cast %53 : vector<16xf32> to vector<16x1xf32>
    %55 = tpu.reciprocal %54 {approx = true} : vector<16x1xf32> -> vector<16x1xf32>
    %56 = vector.broadcast %55 : vector<16x1xf32> to vector<16x8xf32>
    %57 = arith.mulf %52, %56 : vector<16x8xf32>
    %58 = arith.truncf %57 : vector<16x8xf32> to vector<16x8xbf16>
    %cst_26 = arith.constant dense<0.000000e+00> : vector<16x8xf32>
    %59 = tpu.matmul %58, %44, %cst_26 {dimension_numbers = #tpu.dot_dimension_numbers<[1], [0], [0], [1], [0, 0, 1, 1], [], []>} : vector<16x8xbf16>, vector<8x8xbf16>, vector<16x8xf32> -> vector<16x8xf32>
    %60 = vector.extract_strided_slice %12 {offsets = [0, 16], sizes = [16, 8], strides = [1, 1]} : vector<16x32xbf16> to vector<16x8xbf16>
    %61 = vector.extract_strided_slice %13 {offsets = [0, 16], sizes = [8, 8], strides = [1, 1]} : vector<8x32xbf16> to vector<8x8xbf16>
    %62 = vector.extract_strided_slice %14 {offsets = [0, 16], sizes = [8, 8], strides = [1, 1]} : vector<8x32xbf16> to vector<8x8xbf16>
    %cst_27 = arith.constant dense<0.000000e+00> : vector<16x8xf32>
    %63 = tpu.matmul %60, %61, %cst_27 {dimension_numbers = #tpu.dot_dimension_numbers<[1], [1], [0], [0], [0, 0, 1, 0], [], []>} : vector<16x8xbf16>, vector<8x8xbf16>, vector<16x8xf32> -> vector<16x8xf32>
    %64 = vector.broadcast %17 : vector<1x8xf32> to vector<16x8xf32>
    %65 = arith.addf %63, %64 : vector<16x8xf32>
    %cst_28 = arith.constant dense<0xFF800000> : vector<16xf32>
    %66 = vector.multi_reduction <maximumf>, %65, %cst_28 [1] : vector<16x8xf32> to vector<16xf32>
    %67 = vector.shape_cast %66 : vector<16xf32> to vector<16x1xf32>
    %68 = vector.broadcast %67 : vector<16x1xf32> to vector<16x8xf32>
    %69 = arith.subf %65, %68 : vector<16x8xf32>
    %70 = math.exp %69 : vector<16x8xf32>
    %cst_29 = arith.constant dense<0.000000e+00> : vector<16xf32>
    %71 = vector.multi_reduction <add>, %70, %cst_29 [1] : vector<16x8xf32> to vector<16xf32>
    %72 = vector.shape_cast %71 : vector<16xf32> to vector<16x1xf32>
    %73 = tpu.reciprocal %72 {approx = true} : vector<16x1xf32> -> vector<16x1xf32>
    %74 = vector.broadcast %73 : vector<16x1xf32> to vector<16x8xf32>
    %75 = arith.mulf %70, %74 : vector<16x8xf32>
    %76 = arith.truncf %75 : vector<16x8xf32> to vector<16x8xbf16>
    %cst_30 = arith.constant dense<0.000000e+00> : vector<16x8xf32>
    %77 = tpu.matmul %76, %62, %cst_30 {dimension_numbers = #tpu.dot_dimension_numbers<[1], [0], [0], [1], [0, 0, 1, 1], [], []>} : vector<16x8xbf16>, vector<8x8xbf16>, vector<16x8xf32> -> vector<16x8xf32>
    %78 = vector.extract_strided_slice %12 {offsets = [0, 24], sizes = [16, 8], strides = [1, 1]} : vector<16x32xbf16> to vector<16x8xbf16>
    %79 = vector.extract_strided_slice %13 {offsets = [0, 24], sizes = [8, 8], strides = [1, 1]} : vector<8x32xbf16> to vector<8x8xbf16>
    %80 = vector.extract_strided_slice %14 {offsets = [0, 24], sizes = [8, 8], strides = [1, 1]} : vector<8x32xbf16> to vector<8x8xbf16>
    %cst_31 = arith.constant dense<0.000000e+00> : vector<16x8xf32>
    %81 = tpu.matmul %78, %79, %cst_31 {dimension_numbers = #tpu.dot_dimension_numbers<[1], [1], [0], [0], [0, 0, 1, 0], [], []>} : vector<16x8xbf16>, vector<8x8xbf16>, vector<16x8xf32> -> vector<16x8xf32>
    %82 = vector.broadcast %17 : vector<1x8xf32> to vector<16x8xf32>
    %83 = arith.addf %81, %82 : vector<16x8xf32>
    %cst_32 = arith.constant dense<0xFF800000> : vector<16xf32>
    %84 = vector.multi_reduction <maximumf>, %83, %cst_32 [1] : vector<16x8xf32> to vector<16xf32>
    %85 = vector.shape_cast %84 : vector<16xf32> to vector<16x1xf32>
    %86 = vector.broadcast %85 : vector<16x1xf32> to vector<16x8xf32>
    %87 = arith.subf %83, %86 : vector<16x8xf32>
    %88 = math.exp %87 : vector<16x8xf32>
    %cst_33 = arith.constant dense<0.000000e+00> : vector<16xf32>
    %89 = vector.multi_reduction <add>, %88, %cst_33 [1] : vector<16x8xf32> to vector<16xf32>
    %90 = vector.shape_cast %89 : vector<16xf32> to vector<16x1xf32>
    %91 = tpu.reciprocal %90 {approx = true} : vector<16x1xf32> -> vector<16x1xf32>
    %92 = vector.broadcast %91 : vector<16x1xf32> to vector<16x8xf32>
    %93 = arith.mulf %88, %92 : vector<16x8xf32>
    %94 = arith.truncf %93 : vector<16x8xf32> to vector<16x8xbf16>
    %cst_34 = arith.constant dense<0.000000e+00> : vector<16x8xf32>
    %95 = tpu.matmul %94, %80, %cst_34 {dimension_numbers = #tpu.dot_dimension_numbers<[1], [0], [0], [1], [0, 0, 1, 1], [], []>} : vector<16x8xbf16>, vector<8x8xbf16>, vector<16x8xf32> -> vector<16x8xf32>
    %96 = tpu.concatenate %41, %59, %77, %95 in 1 : vector<16x8xf32>, vector<16x8xf32>, vector<16x8xf32>, vector<16x8xf32> -> vector<16x32xf32>
    %97 = arith.truncf %96 : vector<16x32xf32> to vector<16x32xbf16>
    %cst_35 = arith.constant dense<0.000000e+00> : vector<16x32xf32>
    %98 = tpu.matmul %97, %15, %cst_35 {dimension_numbers = #tpu.dot_dimension_numbers<[1], [0], [0], [1], [0, 0, 1, 1], [], []>} : vector<16x32xbf16>, vector<32x32xbf16>, vector<16x32xf32> -> vector<16x32xf32>
    %99 = vector.broadcast %23 : vector<1x1xf32> to vector<16x32xf32>
    %100 = arith.mulf %98, %99 : vector<16x32xf32>
    %c0_36 = arith.constant 0 : index
    %c0_37 = arith.constant 0 : index
    %101 = vector.load %arg13[%c0_36, %c0_37] : memref<1x32xf32, #tpu.memory_space<vmem>>, vector<1x32xf32>
    %102 = vector.broadcast %101 : vector<1x32xf32> to vector<16x32xf32>
    %103 = arith.addf %100, %102 : vector<16x32xf32>
    %c0_38 = arith.constant 0 : index
    %c0_39 = arith.constant 0 : index
    %c0_40 = arith.constant 0 : index
    %104 = vector.load %arg14[%c0_38, %c0_39, %c0_40] : memref<1x16x32xf32, #tpu.memory_space<vmem>>, vector<1x16x32xf32>
    %105 = vector.shape_cast %104 : vector<1x16x32xf32> to vector<16x32xf32>
    %106 = vector.shape_cast %103 : vector<16x32xf32> to vector<1x16x32xf32>
    tpu.vector_store %arg14[%c0_38, %c0_39, %c0_40], %106 {strides = array<i32>} : memref<1x16x32xf32, #tpu.memory_space<vmem>>, vector<1x16x32xf32>,
    return
  }
  func.func @transform_0(%arg0: i32, %arg1: i32) -> (i32, i32, i32) {
    %c0_i32 = arith.constant 0 : i32
    %c0_i32_0 = arith.constant 0 : i32
    return %arg0, %arg1, %c0_i32 : i32, i32, i32
  }
  func.func @transform_1(%arg0: i32, %arg1: i32) -> (i32, i32, i32) {
    %c0_i32 = arith.constant 0 : i32
    %c0_i32_0 = arith.constant 0 : i32
    %c0_i32_1 = arith.constant 0 : i32
    return %arg0, %c0_i32, %c0_i32_0 : i32, i32, i32
  }
  func.func @transform_2(%arg0: i32, %arg1: i32) -> (i32, i32, i32) {
    %c0_i32 = arith.constant 0 : i32
    %c0_i32_0 = arith.constant 0 : i32
    %c0_i32_1 = arith.constant 0 : i32
    return %arg0, %c0_i32, %c0_i32_0 : i32, i32, i32
  }
  func.func @transform_3(%arg0: i32, %arg1: i32) -> (i32, i32, i32) {
    %c0_i32 = arith.constant 0 : i32
    %c0_i32_0 = arith.constant 0 : i32
    %c0_i32_1 = arith.constant 0 : i32
    return %arg0, %c0_i32, %c0_i32_0 : i32, i32, i32
  }
  func.func @transform_4(%arg0: i32, %arg1: i32) -> (i32, i32) {
    %c0_i32 = arith.constant 0 : i32
    %c0_i32_0 = arith.constant 0 : i32
    %c0_i32_1 = arith.constant 0 : i32
    return %c0_i32, %c0_i32_0 : i32, i32
  }
  func.func @transform_5(%arg0: i32, %arg1: i32) -> (i32, i32) {
    %c0_i32 = arith.constant 0 : i32
    %c0_i32_0 = arith.constant 0 : i32
    %c0_i32_1 = arith.constant 0 : i32
    return %c0_i32, %c0_i32_0 : i32, i32
  }
  func.func @transform_6(%arg0: i32, %arg1: i32) -> (i32, i32) {
    %c0_i32 = arith.constant 0 : i32
    %c0_i32_0 = arith.constant 0 : i32
    %c0_i32_1 = arith.constant 0 : i32
    return %c0_i32, %c0_i32_0 : i32, i32
  }
  func.func @transform_7(%arg0: i32, %arg1: i32) -> (i32, i32) {
    %c0_i32 = arith.constant 0 : i32
    %c0_i32_0 = arith.constant 0 : i32
    %c0_i32_1 = arith.constant 0 : i32
    return %c0_i32, %c0_i32_0 : i32, i32
  }
  func.func @transform_8(%arg0: i32, %arg1: i32) -> (i32, i32) {
    %c0_i32 = arith.constant 0 : i32
    %c0_i32_0 = arith.constant 0 : i32
    %c0_i32_1 = arith.constant 0 : i32
    return %c0_i32, %c0_i32_0 : i32, i32
  }
  func.func @transform_9(%arg0: i32, %arg1: i32) -> (i32, i32) {
    %c0_i32 = arith.constant 0 : i32
    %c0_i32_0 = arith.constant 0 : i32
    %c0_i32_1 = arith.constant 0 : i32
    return %c0_i32, %c0_i32_0 : i32, i32
  }
  func.func @transform_10(%arg0: i32, %arg1: i32) -> (i32, i32) {
    %c0_i32 = arith.constant 0 : i32
    %c0_i32_0 = arith.constant 0 : i32
    %c0_i32_1 = arith.constant 0 : i32
    return %c0_i32, %c0_i32_0 : i32, i32
  }
  func.func @transform_11(%arg0: i32, %arg1: i32) -> (i32, i32) {
    %c0_i32 = arith.constant 0 : i32
    %c0_i32_0 = arith.constant 0 : i32
    %c0_i32_1 = arith.constant 0 : i32
    return %c0_i32, %c0_i32_0 : i32, i32
  }
  func.func @transform_12(%arg0: i32, %arg1: i32) -> (i32, i32, i32) {
    %c0_i32 = arith.constant 0 : i32
    %c0_i32_0 = arith.constant 0 : i32
    return %arg0, %arg1, %c0_i32 : i32, i32, i32
  }
}

</mosaic_0001>

<bundles_post_ra>
// kernel: tpu_custom_call.1
= control target key start
LH: loop header
LB: loop body
LE: loop exit
PB: predicated region body
PF: predicated region fallthrough
CT: control target
= control target key end

     0   :  { %s2887_s0 = inlined_call_operand.hbm [shape: bf16[3,16,32], index: 0, kind: input, shape index: {}]   ;;  %s2888_s1 = inlined_call_operand.hbm [shape: bf16[3,8,32], index: 1, kind: input, shape index: {}]   ;;  %s2889_s2 = inlined_call_operand.hbm [shape: bf16[3,8,32], index: 2, kind: input, shape index: {}]   ;;  %s2890_s3 = inlined_call_operand.hbm [shape: f32[3,1,8], index: 3, kind: input, shape index: {}]   ;;  %s2891_s4 = inlined_call_operand.hbm [shape: bf16[32,32], index: 4, kind: input, shape index: {}]   ;;  %s2892_s5 = inlined_call_operand.vmem [shape: f32[1,32], index: 5, kind: input, shape index: {}]   ;;  %s2893_s6 = inlined_call_operand.vmem [shape: bf16[32,32], index: 6, kind: input, shape index: {}]   ;;  %s2894_s7 = inlined_call_operand.vmem [shape: f32[1,32], index: 7, kind: input, shape index: {}]   ;;  %s2895_s8 = inlined_call_operand.hbm [shape: bf16[32,32], index: 8, kind: input, shape index: {}]   ;;  %s2896_s9 = inlined_call_operand.hbm [shape: f32[1,32], index: 9, kind: input, shape index: {}]   ;;  %s2897_s10 = inlined_call_operand.vmem [shape: bf16[32,32], index: 10, kind: input, shape index: {}]   ;;  %s2898_s11 = inlined_call_operand.vmem [shape: f32[1,32], index: 11, kind: input, shape index: {}]   ;;  %s2899_s12 = inlined_call_operand.hbm [shape: f32[3,16,32], index: 12, kind: output, shape index: {}]  }
   0x1   :  { %2922 = sst [smem:[#allocation30_spill]] %s2888_s1 }
   0x2   :  { %2923 = sst [smem:[#allocation31_spill]] %s2891_s4 }
   0x3   :  { %2924 = sst [smem:[#allocation32_spill]] %s2892_s5 }
   0x4   :  { %2925 = sst [smem:[#allocation33_spill]] %s2894_s7 }
   0x5   :  { %2926 = sst [smem:[#allocation34_spill]] %s2895_s8 }
   0x6   :  { %2927 = sst [smem:[#allocation35_spill]] %s2897_s10 }
   0x7   :  { %2928 = sst [smem:[#allocation36_spill]] %s2898_s11 }
   0x8   :  { %2929 = sst [smem:[#allocation37_spill]] %s2899_s12 }
   0x9   :  { %17 = vsyncpa [#allocation5], 0 }
   0xa   :  { %19 = vsyncpa [#allocation5 + $0x1], 0 }
   0xb   :  { %20 = vsyncpa [#allocation8], 0 }
   0xc   :  { %22 = vsyncpa [#allocation8 + $0x1], 0 }
   0xd   :  { %23 = vsyncpa [#allocation11], 0 }
   0xe   :  { %25 = vsyncpa [#allocation11 + $0x1], 0 }
   0xf   :  { %26 = vsyncpa [#allocation14], 0 }
  0x10   :  { %27 = vsyncpa [#allocation6], 0 }
  0x11   :  { %29 = vsyncpa [#allocation6 + $0x1], 0  ;;  %s2367_s21 = smov 0   ;;  %s2369_s22 = smov 0  }
  0x12   :  { %s2371_s23 = smov 0   ;;  %s2373_s24 = smov 0  }
  0x13   :  { %s2375_s25 = smov 0   ;;  %s2377_s26 = smov 0  }
  0x14 LB: > { %2930 = sst [smem:[#allocation23_spill]] %s2261_s21  ;;  %s2398_s27 = sadd.s32 4294967295, %s2281_s26   ;;  %s2281_s26 = sphi %s2377_s26, %s35_s26   ;;  %s2277_s25 = sphi %s2375_s25, %s2982_s25   ;;  %s2273_s24 = sphi %s2373_s24, %s2981_s24   ;;  %s2269_s23 = sphi %s2371_s23, %s2977_s23   ;;  %s2265_s22 = sphi %s2369_s22, %s2980_s22   ;;  %s2261_s21 = sphi %s2367_s21, %s2979_s21  }
  0x15   : > { %2931 = sst [smem:[#allocation24_spill]] %s2269_s23  ;;  %s1637_s28 = sadd.s32 4294967294, %s2281_s26  }
  0x16   : > { %2932 = sst [smem:[#allocation25_spill]] %s2273_s24  ;;  %p69_p0 = scmp.ne.s32.totalorder %s2265_s22, %s2261_s21 }
  0x17   : > { %p2903_p1 = scmp.eq.s32.totalorder %s2398_s27, 0  ;;  %p347_p3 = scmp.eq.s32.totalorder %s1637_s28, 2 }
  0x18   : > { %p1638_p5 = scmp.ge.s32.totalorder %s2281_s26, 1  ;;  %p354_p7 = scmp.lt.s32.totalorder %s2281_s26, 4 }
  0x19   : > { %p2407_p4 = por %p2903_p1, %p69_p0  ;;  %p2412_p6 = por %p347_p3, %p69_p0 }
  0x1a   : > { %p2417_p8 = pnand %p1638_p5, %p354_p7  ;;  %s2283_s14 = smov [#allocation12]  }
  0x1b   : > { %s2933_s29 = scalar_select %p2407_p4, 1, 0 }
  0x1c   : > { %s2934_s30 = scalar_select %p2412_p6, 1, 0 }
  0x1d   : > { %s2936_s13 = scalar_select %p2417_p8, 1, 0 }
  0x1e   : > { %2935 = sst [smem:[#allocation26_spill]] %s2934_s30  ;;  %s366_s15 = sshll.u32 %s2283_s14, 4  ;;  %s367_s15 = int_to_ptr.vmem [resolvable:$true] %s366_s15 }
  0x1f   : > { %p1824_p9 = pneg %p2417_p8  ;;  %s2284_s17 = smov [#allocation13]  }
  0x20   : > { %s388_s18 = sshll.u32 %s2284_s17, 4  ;;  %s2938_s4 = sld [smem:[#allocation31_spill]]  ;;  %s2429_s18 = int_to_ptr.vmem [resolvable:$true] %s388_s18 }
  0x21   : > { %p2425_p10 = pnand %p1824_p9, %p2903_p1 }
  0x23   : > { %s2937_s16 = scalar_select %p2425_p10, 1, 0 }
  0x24   : > { %p2439_p12 = pneg %p2425_p10 }
  0x26   : > { %s1979_s28 = scalar_lea.hbm %s2938_s4, 256 }
  0x27   : > { %p1980_p11 = scmp.ne.s32.totalorder %s2938_s4, %s1979_s28  ;;  %p1986_p3 = scmp.lt.u32.totalorder %s1979_s28, %s2938_s4 }
  0x28   : > { %s2939_s14 = scalar_select %p2439_p12, 1, 0 }
  0x29   : > { %p1982_p13 = pnand %p2439_p12, %p1980_p11 }
  0x2b   : > { %p1983_p0 = pneg %p1982_p13 }
  0x2d   : > { %p1988_p5 = pnand %p1986_p3, %p1983_p0 }
  0x2f   : > { %1991 = shalt.err (!%p1988_p5)
}
  0x30   : > { %s1992_s19 = scalar_lea.vmem %s367_s15, 256  ;;  %p2000_p2 = scmp.lt.s32.totalorder %s367_s15, %s367_s15 }
  0x31   : > { %p1993_p7 = scmp.ne.s32.totalorder %s367_s15, %s1992_s19  ;;  %p2001_p6 = scmp.lt.s32.totalorder %s1992_s19, %s1992_s19 }
  0x33   : > { %p1995_p9 = pnand %p1993_p7, %p2439_p12  ;;  %p2002_p4 = por %p2001_p6, %p2000_p2 }
  0x35   : > { %p1996_p1 = pneg %p1995_p9 }
  0x37   : > { %p2003_p8 = pnand %p2002_p4, %p1996_p1 }
  0x39   : > { %2006 = shalt.err (!%p2003_p8)
}
  0x3a   : > { %s2907_s21 = smov 64   ;;  %s2908_s30 = smov 4  }
  0x3b   : > { %1827 = dma.hbm_to_vmem [thread:$0]  (!%p2425_p10), %s2938_s4, 256, %s367_s15, [#allocation11], %s2907_s21, %s2907_s21, %s2908_s30  }
  0x3c   : > { %s2940_s8 = sld [smem:[#allocation34_spill]] }
  0x42   : > { %s2007_s11 = scalar_lea.hbm %s2940_s8, 256 }
  0x43   : > { %p2008_p1 = scmp.ne.s32.totalorder %s2940_s8, %s2007_s11  ;;  %p2014_p6 = scmp.lt.u32.totalorder %s2007_s11, %s2940_s8 }
  0x45   : > { %p2010_p2 = pnand %p2008_p1, %p2439_p12 }
  0x47   : > { %p2011_p4 = pneg %p2010_p2 }
  0x49   : > { %p2016_p8 = pnand %p2014_p6, %p2011_p4 }
  0x4b   : > { %2019 = shalt.err (!%p2016_p8)
}
  0x4c   : > { %s2020_s15 = scalar_lea.vmem %s2429_s18, 256  ;;  %p2028_p3 = scmp.lt.s32.totalorder %s2429_s18, %s2429_s18 }
  0x4d   : > { %p2021_p11 = scmp.ne.s32.totalorder %s2429_s18, %s2020_s15  ;;  %p2029_p5 = scmp.lt.s32.totalorder %s2020_s15, %s2020_s15 }
  0x4f   : > { %p2023_p13 = pnand %p2021_p11, %p2439_p12  ;;  %p2030_p7 = por %p2029_p5, %p2028_p3 }
  0x51   : > { %p2024_p0 = pneg %p2023_p13 }
  0x53   : > { %p2031_p9 = pnand %p2030_p7, %p2024_p0 }
  0x55   : > { %2034 = shalt.err (!%p2031_p9)
}
  0x56   : > { %1830 = dma.hbm_to_vmem [thread:$0]  (!%p2425_p10), %s2940_s8, 256, %s2429_s18, [#allocation14], %s2907_s21, %s2907_s21, %s2908_s30  }
  0x57   : > { %s47_s11 = sadd.s32 1, %s2277_s25  ;;  %s56_s24 = sadd.s32 1, %s2269_s23 }
  0x58   : > { %p49_p1 = scmp.ge.s32.totalorder %s47_s11, 3  ;;  %p63_p2 = scmp.ne.s32.totalorder %s2269_s23, %s2265_s22 }
  0x59   : > { %p64_p4 = scmp.eq.s32.totalorder %s2281_s26, 0  ;;  %p1854_p6 = scmp.lt.s32.totalorder %s2281_s26, 3 }
  0x5a   : > { %s2984_s11 = smov (%p49_p1, %s47_s11), 0  ;;  %p2942_p11 = scmp.eq.s32.totalorder %s2398_s27, 2 }
  0x5b   : > { %2941 = sst [smem:[#allocation27_spill]] %s2984_s11  ;;  %p65_p8 = por %p64_p4, %p63_p2 }
  0x5c   : > { %p2494_p13 = por %p2942_p11, %p63_p2  ;;  %s51_s18 = ssub.s32 %s2277_s25, %s2984_s11 }
  0x5d   : > { %s2501_s20 = sand.u32 1, %s2269_s23   ;;  %p54_p0 = scmp.eq.s32.totalorder %s51_s18, 0 }
  0x5e   : > { %s2943_s12 = scalar_select %p2494_p13, 1, 0 }
  0x5f   : > { %p2503_p3 = pnand %p1854_p6, %p65_p8  ;;  %s2912_s17 = sand.u32 1, %s2281_s26  }
  0x60   : > { %2944 = sst [smem:[#allocation28_spill]] %s2943_s12  ;;  %s2910_s19 = sshll.u32 %s2501_s20, 2 }
  0x61   : > { %s2945_s28 = scalar_select %p2503_p3, 1, 0 }
  0x62   : > { %s2510_s15 = scalar_select %p54_p0, %s2269_s23, %s56_s24  }
  0x63   : > { %s2911_s5 = sshll.u32 %s2277_s25, 6  ;;  %s2947_s1 = sld [smem:[#allocation30_spill]] }
  0x64   : > { %2946 = sst [smem:[#allocation29_spill]] %s2510_s15  ;;  %s446_s18 = scalar_lea.vmem [#allocation7], %s2910_s19 }
  0x65   : > { %s453_s4 = sshll.u32 %s446_s18, 4  ;;  %s2526_s8 = scalar_lea.sflag [#allocation8], %s2912_s17  ;;  %s2522_s4 = int_to_ptr.vmem [resolvable:$true] %s453_s4 }
  0x66   : > { %p2532_p7 = pneg %p2503_p3 }
  0x69   : > { %s2518_s30 = scalar_lea.hbm %s2947_s1, %s2911_s5  ;;  %s2040_s18 = scalar_lea.hbm %s2947_s1, 192 }
  0x6a   : > { %s2035_s24 = scalar_lea.hbm %s2518_s30, 64  ;;  %p2041_p2 = scmp.lt.u32.totalorder %s2518_s30, %s2947_s1 }
  0x6b   : > { %p2036_p5 = scmp.ne.s32.totalorder %s2518_s30, %s2035_s24  ;;  %p2042_p4 = scmp.lt.u32.totalorder %s2040_s18, %s2035_s24 }
  0x6c   : > { %p2044_p8 = scmp.lt.u32.totalorder %s2035_s24, %s2518_s30 }
  0x6d   : > { %p2038_p9 = pnand %p2532_p7, %p2036_p5  ;;  %p2043_p6 = por %p2042_p4, %p2041_p2 }
  0x6f   : > { %p2039_p1 = pneg %p2038_p9  ;;  %p2045_p11 = por %p2044_p8, %p2043_p6 }
  0x71   : > { %p2046_p0 = pnand %p2045_p11, %p2039_p1 }
  0x73   : > { %2049 = shalt.err (!%p2046_p0)
}
  0x74   : > { %s2050_s17 = scalar_lea.vmem %s2522_s4, 64  ;;  %s2287_s21 = smov [#allocation7]  }
  0x75   : > { %p2051_p5 = scmp.ne.s32.totalorder %s2522_s4, %s2050_s17  ;;  %s2055_s10 = sshll.u32 %s2287_s21, 4  ;;  %s2056_s10 = int_to_ptr.vmem [resolvable:$false] %s2055_s10 }
  0x76   : > { %s2057_s19 = scalar_lea.vmem %s2056_s10, 128  ;;  %p2058_p10 = scmp.lt.s32.totalorder %s2522_s4, %s2056_s10 }
  0x77   : > { %p2053_p9 = pnand %p2051_p5, %p2532_p7  ;;  %p2059_p12 = scmp.lt.s32.totalorder %s2057_s19, %s2050_s17 }
  0x79   : > { %p2054_p13 = pneg %p2053_p9  ;;  %p2060_p2 = por %p2059_p12, %p2058_p10 }
  0x7b   : > { %p2061_p4 = pnand %p2060_p2, %p2054_p13 }
  0x7d   : > { %2064 = shalt.err (!%p2061_p4)
}
  0x7e   : > { %1840 = dma.hbm_to_vmem [thread:$0]  (!%p2503_p3), %s2518_s30, 64, %s2522_s4, %s2526_s8  }
  0x7f   : > { %s2949_s5 = sshll.u32 %s2277_s25, 6  ;;  %s2288_s10 = smov [#allocation15]  }
  0x80   : > { %s2561_s21 = scalar_lea.hbm %s2889_s2, %s2949_s5  ;;  %s402_s17 = sshll.u32 %s2288_s10, 4  ;;  %s403_s17 = int_to_ptr.vmem [resolvable:$true] %s402_s17 }
  0x81   : > { %s1643_s19 = sshll.u32 %s2501_s20, 3  ;;  %s2065_s23 = scalar_lea.hbm %s2896_s9, 16 }
  0x82   : > { %p2066_p10 = scmp.ne.s32.totalorder %s2896_s9, %s2065_s23  ;;  %p2950_p12 = scmp.ne.s32.totalorder %s2939_s14, 0 }
  0x83   : > { %p2072_p6 = scmp.lt.u32.totalorder %s2065_s23, %s2896_s9 }
  0x84   : > { %p2068_p13 = pnand %p2066_p10, %p2950_p12 }
  0x86   : > { %p2069_p1 = pneg %p2068_p13 }
  0x88   : > { %p2074_p8 = pnand %p2072_p6, %p2069_p1 }
  0x8a   : > { %2077 = shalt.err (!%p2074_p8)
}
  0x8b   : > { %s2078_s5 = scalar_lea.vmem %s403_s17, 16  ;;  %s2085_s1 = scalar_lea.vmem %s403_s17, 32 }
  0x8c   : > { %p2079_p11 = scmp.ne.s32.totalorder %s403_s17, %s2078_s5  ;;  %p2086_p9 = scmp.lt.s32.totalorder %s403_s17, %s403_s17 }
  0x8d   : > { %p2087_p2 = scmp.lt.s32.totalorder %s2085_s1, %s2078_s5 }
  0x8e   : > { %p2081_p0 = pnand %p2079_p11, %p2950_p12 }
  0x8f   : > { %p2088_p4 = por %p2087_p2, %p2086_p9 }
  0x90   : > { %p2082_p5 = pneg %p2081_p0 }
  0x92   : > { %p2089_p3 = pnand %p2088_p4, %p2082_p5 }
  0x94   : > { %2092 = shalt.err (!%p2089_p3)
}
  0x95   : > { %p2951_p10 = scmp.ne.s32.totalorder %s2937_s16, 0  ;;  %s1692_s23 = sshll.u32 %s2277_s25, 7 }
  0x96   : > { %s423_s15 = scalar_lea.vmem [#allocation4], %s1643_s19  ;;  %s2586_s10 = scalar_lea.hbm %s2887_s0, %s1692_s23 }
  0x97   : > { %1833 = dma.hbm_to_vmem [thread:$0]  (!%p2951_p10), %s2896_s9, 16, %s403_s17, [#allocation14]  }
  0x98   : > { %s432_s14 = sshll.u32 %s423_s15, 4  ;;  %s420_s16 = scalar_lea.sflag [#allocation5], %s2501_s20  ;;  %s2588_s14 = int_to_ptr.vmem [resolvable:$true] %s432_s14 }
  0x99   : > { %s2093_s4 = scalar_lea.hbm %s2586_s10, 128  ;;  %s2098_s30 = scalar_lea.hbm %s2887_s0, 384 }
  0x9a   : > { %p2094_p3 = scmp.ne.s32.totalorder %s2586_s10, %s2093_s4  ;;  %p2099_p1 = scmp.lt.u32.totalorder %s2586_s10, %s2887_s0 }
  0x9b   : > { %p2100_p6 = scmp.lt.u32.totalorder %s2098_s30, %s2093_s4  ;;  %p2102_p11 = scmp.lt.u32.totalorder %s2093_s4, %s2586_s10 }
  0x9c   : > { %p2096_p12 = pnand %p2094_p3, %p2532_p7 }
  0x9d   : > { %p2101_p8 = por %p2100_p6, %p2099_p1 }
  0x9e   : > { %p2097_p13 = pneg %p2096_p12 }
  0x9f   : > { %p2103_p0 = por %p2102_p11, %p2101_p8 }
  0xa1   : > { %p2104_p5 = pnand %p2103_p0, %p2097_p13 }
  0xa3   : > { %2107 = shalt.err (!%p2104_p5)
}
  0xa4   : > { %s2108_s7 = scalar_lea.vmem %s2588_s14, 128  ;;  %s2289_s12 = smov [#allocation4]  }
  0xa5   : > { %p2109_p9 = scmp.ne.s32.totalorder %s2588_s14, %s2108_s7  ;;  %s2113_s23 = sshll.u32 %s2289_s12, 4  ;;  %s2114_s23 = int_to_ptr.vmem [resolvable:$false] %s2113_s23 }
  0xa6   : > { %s2115_s15 = scalar_lea.vmem %s2114_s23, 256  ;;  %p2116_p10 = scmp.lt.s32.totalorder %s2588_s14, %s2114_s23 }
  0xa7   : > { %p2111_p2 = pnand %p2109_p9, %p2532_p7  ;;  %p2117_p3 = scmp.lt.s32.totalorder %s2115_s15, %s2108_s7 }
  0xa9   : > { %p2112_p4 = pneg %p2111_p2  ;;  %p2118_p12 = por %p2117_p3, %p2116_p10 }
  0xab   : > { %p2119_p1 = pnand %p2118_p12, %p2112_p4 }
  0xad   : > { %2122 = shalt.err (!%p2119_p1)
}
  0xae   : > { %p2952_p13 = scmp.ne.s32.totalorder %s2945_s28, 0  ;;  %s2953_s24 = smov 4  }
  0xaf   : > { %s2954_s18 = smov 64   ;;  %s2955_s4 = sshll.u32 %s2501_s20, 2 }
  0xb0   : > { %1837 = dma.hbm_to_vmem [thread:$0]  (!%p2952_p13), %s2586_s10, 128, %s2588_s14, %s420_s16, %s2954_s18, %s2954_s18, %s2953_s24  }
  0xb1   : > { %s464_s17 = scalar_lea.vmem [#allocation9], %s2955_s4  ;;  %s1650_s30 = sshll.u32 %s2277_s25, 4 }
  0xb2   : > { %s471_s19 = sshll.u32 %s464_s17, 4  ;;  %s2123_s5 = scalar_lea.hbm %s2561_s21, 64  ;;  %s472_s19 = int_to_ptr.vmem [resolvable:$true] %s471_s19 }
  0xb3   : > { %p2124_p6 = scmp.ne.s32.totalorder %s2561_s21, %s2123_s5  ;;  %s2128_s12 = scalar_lea.hbm %s2889_s2, 192 }
  0xb4   : > { %p2129_p0 = scmp.lt.u32.totalorder %s2561_s21, %s2889_s2  ;;  %p2130_p5 = scmp.lt.u32.totalorder %s2128_s12, %s2123_s5 }
  0xb5   : > { %p2126_p8 = pnand %p2124_p6, %p2532_p7  ;;  %p2132_p2 = scmp.lt.u32.totalorder %s2123_s5, %s2561_s21 }
  0xb6   : > { %p2131_p9 = por %p2130_p5, %p2129_p0 }
  0xb7   : > { %p2127_p11 = pneg %p2126_p8 }
  0xb8   : > { %p2133_p4 = por %p2132_p2, %p2131_p9 }
  0xba   : > { %p2134_p10 = pnand %p2133_p4, %p2127_p11 }
  0xbc   : > { %2137 = shalt.err (!%p2134_p10)
}
  0xbd   : > { %s2138_s14 = scalar_lea.vmem %s472_s19, 64  ;;  %s2290_s10 = smov [#allocation9]  }
  0xbe   : > { %p2139_p3 = scmp.ne.s32.totalorder %s472_s19, %s2138_s14  ;;  %s2143_s16 = sshll.u32 %s2290_s10, 4  ;;  %s2144_s16 = int_to_ptr.vmem [resolvable:$false] %s2143_s16 }
  0xbf   : > { %s2145_s24 = scalar_lea.vmem %s2144_s16, 128  ;;  %p2146_p6 = scmp.lt.s32.totalorder %s472_s19, %s2144_s16 }
  0xc0   : > { %p2141_p12 = pnand %p2139_p3, %p2532_p7  ;;  %p2147_p8 = scmp.lt.s32.totalorder %s2145_s24, %s2138_s14 }
  0xc2   : > { %p2142_p1 = pneg %p2141_p12  ;;  %p2148_p13 = por %p2147_p8, %p2146_p6 }
  0xc4   : > { %p2149_p0 = pnand %p2148_p13, %p2142_p1 }
  0xc6   : > { %2152 = shalt.err (!%p2149_p0)
}
  0xc7   : > { %p2956_p5 = scmp.ne.s32.totalorder %s2945_s28, 0  ;;  %s2641_s17 = scalar_lea.hbm %s2890_s3, %s1650_s30 }
  0xc8   : > { %s481_s5 = scalar_lea.vmem [#allocation10], %s2501_s20  ;;  %s2957_s7 = sand.u32 1, %s2281_s26  }
  0xc9   : > { %1843 = dma.hbm_to_vmem [thread:$0]  (!%p2956_p5), %s2561_s21, 64, %s472_s19, %s2526_s8  }
  0xca   : > { %s488_s1 = sshll.u32 %s481_s5, 4  ;;  %s479_s12 = scalar_lea.sflag [#allocation11], %s2957_s7  ;;  %s489_s1 = int_to_ptr.vmem [resolvable:$true] %s488_s1 }
  0xcb   : > { %s2153_s23 = scalar_lea.hbm %s2641_s17, 16  ;;  %s2158_s19 = scalar_lea.hbm %s2890_s3, 48 }
  0xcc   : > { %p2154_p13 = scmp.ne.s32.totalorder %s2641_s17, %s2153_s23  ;;  %p2159_p2 = scmp.lt.u32.totalorder %s2641_s17, %s2890_s3 }
  0xcd   : > { %p2160_p4 = scmp.lt.u32.totalorder %s2158_s19, %s2153_s23  ;;  %p2162_p3 = scmp.lt.u32.totalorder %s2153_s23, %s2641_s17 }
  0xce   : > { %p2156_p11 = pnand %p2154_p13, %p2532_p7 }
  0xcf   : > { %p2161_p10 = por %p2160_p4, %p2159_p2 }
  0xd0   : > { %p2157_p9 = pneg %p2156_p11 }
  0xd1   : > { %p2163_p12 = por %p2162_p3, %p2161_p10 }
  0xd3   : > { %p2164_p1 = pnand %p2163_p12, %p2157_p9 }
  0xd5   : > { %2167 = shalt.err (!%p2164_p1)
}
  0xd6   : > { %s2168_s20 = scalar_lea.vmem %s489_s1, 16  ;;  %s2291_s14 = smov [#allocation10]  }
  0xd7   : > { %p2169_p6 = scmp.ne.s32.totalorder %s489_s1, %s2168_s20  ;;  %s2173_s10 = sshll.u32 %s2291_s14, 4  ;;  %s2174_s10 = int_to_ptr.vmem [resolvable:$false] %s2173_s10 }
  0xd8   : > { %s2175_s16 = scalar_lea.vmem %s2174_s10, 32  ;;  %p2176_p13 = scmp.lt.s32.totalorder %s489_s1, %s2174_s10 }
  0xd9   : > { %p2171_p8 = pnand %p2169_p6, %p2532_p7  ;;  %p2177_p11 = scmp.lt.s32.totalorder %s2175_s16, %s2168_s20 }
  0xdb   : > { %p2172_p0 = pneg %p2171_p8  ;;  %p2178_p5 = por %p2177_p11, %p2176_p13 }
  0xdd   : > { %p2179_p2 = pnand %p2178_p5, %p2172_p0 }
  0xdf   : > { %2182 = shalt.err (!%p2179_p2)
}
  0xe0   : > { %p2958_p4 = scmp.ne.s32.totalorder %s2945_s28, 0  ;;  %p2959_p9 = scmp.ne.s32.totalorder %s2936_s13, 0 }
  0xe1   : > { %s2666_s11 = sand.u32 (!%p2959_p9), 1, %s2265_s22   ;;  %p2960_p7 = scmp.ne.s32.totalorder (!%p2959_p9), %s2933_s29, 0 }
  0xe2   : > { %1846 = dma.hbm_to_vmem [thread:$0]  (!%p2958_p4), %s2641_s17, 16, %s489_s1, %s479_s12  }
  0xe3   : > { %497 = sbr.rel (%p2959_p9) target bundleno = 1725 (0x6bd), region = 68  ;;  %s1652_s24 = sshll.u32 (!%p2959_p9), %s2666_s11, 3 }
  0xe4   : > { %s500_s18 = scalar_lea.sflag (!%p2959_p9), [#allocation5], %s2666_s11  ;;  %s2670_s4 = scalar_lea.vmem (!%p2959_p9), [#allocation4], %s1652_s24 }
  0xea   : > { %2236 = dma.done.wait (%p2960_p7), %s500_s18, 128  }
  0xeb   : > { %2238 = vsyncadd (%p2960_p7), %s500_s18, 4294967168  ;;  %s508_s13 = sand.u32 1, %s2398_s27   ;;  %s1653_s28 = sshll.u32 %s2666_s11, 2 }
  0xec   : > { %s509_s17 = scalar_lea.sflag [#allocation8], %s508_s13  ;;  %s512_s5 = scalar_lea.vmem [#allocation7], %s1653_s28 }
  0xed   : > { %2240 = dma.done.wait (%p2960_p7), %s509_s17, 128  }
  0xee   : > { %2242 = vsyncadd (%p2960_p7), %s509_s17, 4294967168  ;;  %s2682_s1 = scalar_lea.vmem [#allocation9], %s1653_s28  ;;  %s527_s7 = scalar_lea.sflag [#allocation11], %s508_s13 }
  0xef   : > { %s529_s12 = scalar_lea.vmem [#allocation10], %s2666_s11 }
  0xf0   : > { %2244 = dma.done.wait (%p2960_p7), %s527_s7, 16  }
  0xf1   : > { %2246 = vsyncadd (%p2960_p7), %s527_s7, 4294967280  ;;  %p2961_p5 = scmp.eq.s32.totalorder %s2398_s27, 0 }
  0xf3   : > { %2248 = dma.done.wait (%p2961_p5), [#allocation11], 256   ;;  %p2962_p10 = pmov %p2961_p5 }
  0xf4   : > { %p2963_p3 = pmov %p2961_p5 }
  0xf5   : > { %2250 = vsyncadd (%p2962_p10), [#allocation11], 4294967040 }
  0xf6   : > { %2252 = dma.done.wait (%p2963_p3), [#allocation14], 272   ;;  %p2964_p12 = pmov %p2963_p3 }
  0xf7   : > { %v2292_v0 = vmov 0.0   ;;  %vm2293_vm0 = vmmov 0   ;;  %v1936_v1 = vld [vmem:[%s2893_s6] sm:$0xff]   ;;  %v1937_v2 = vld [vmem:[%s2893_s6 + $0x8] sm:$0xff]   ;;  %v603_v3 = vld [vmem:[%s512_s5] sm:$0xf]  ;;  %v836_v48 = vlaneseq }
  0xf8   : > { %2254 = vsyncadd (%p2964_p12), [#allocation14], 4294967024  ;;  %1722 = vmatprep.subr.bf16.mxu0 %v2292_v0  ;;  %1726 = vmatprep.mubr.msk.bf16.mxu0 %vm2293_vm0, %v2292_v0  ;;  %vm628_vm1 = vcmask 261120   ;;  %v1938_v4 = vld [vmem:[#allocation12] sm:$0xff]   ;;  %v1939_v5 = vld [vmem:[#allocation12 + $0x8] sm:$0xff]   ;;  %s2965_s30 = sld [smem:[#allocation33_spill]] }
  0xf9   : > { %1730 = vmatprep.subr.bf16.mxu1 %v2292_v0  ;;  %1734 = vmatprep.mubr.msk.bf16.mxu1 %vm2293_vm0, %v2292_v0  ;;  %v1940_v6 = vld [vmem:[%s2670_s4] sm:$0xff]   ;;  %v1941_v7 = vld [vmem:[#allocation13] sm:$0xff]   ;;  %vm673_vm2 = vcmask 257024   ;;  %s2966_s14 = sld [smem:[#allocation32_spill]]  ;;  %vm841_vm3 = vcmask 64512   ;;  %s2294_s10 = smov 112  }
  0xfa   : > { %1723 = vmatpush3.bf16.msra.mxu0 %v1936_v1  ;;  %1731 = vmatpush3.bf16.msra.mxu1 %v1941_v7  ;;  %v1942_v8 = vld [vmem:[#allocation13 + $0x8] sm:$0xff]   ;;  %s2295_s16 = smov 120   ;;  %s2296_s24 = smov 104   ;;  %v1663_v30 = vld [vmem:[#allocation15] ss:$0 sm:$0xff]  ;;  %vm915_vm4 = vcmask 1043456  }
  0xfb   : > { %1724 = vmatprep.subr.bf16.mxu0 %v2292_v0  ;;  %1732 = vmatprep.subr.bf16.mxu1 %v2292_v0  ;;  %v604_v9 = vld [vmem:[%s2682_s1] sm:$0xf]  ;;  %v2765_v49 = vshrl.u32 %v836_v48, 7  ;;  %s2967_s13 = sld [smem:[#allocation35_spill]]  ;;  %s2297_s28 = smov 8   ;;  %vm828_vm5 = vcmask 57344  }
  0xfc   : > { %v2770_v51 = vld [vmem:[%s529_s12] sm:$0x1]  ;;  %s2298_s1 = smov 16   ;;  %s2299_s7 = smov 24   ;;  %vm1362_vm6 = vcmask 130048   ;;  %vm1365_vm7 = vcmask 195584  }
  0xfd   : > { %v838_v50 = vsub.s32 0, %v2765_v49  ;;  %s2968_s12 = sld [smem:[#allocation25_spill]]  ;;  %s1658_s29 = sshll.u32 %s2666_s11, 4 }
  0xfe   : > { %1725 = vmatpush3.bf16.msra.mxu0 %v1937_v2  ;;  %1733 = vmatpush3.bf16.msra.mxu1 %v1942_v8  ;;  %v1659_v10 = vld [vmem:[%s2965_s30] ss:$0 sm:$0xff]  ;;  %s2969_s8 = sld [smem:[#allocation36_spill]]  ;;  %s595_s30 = scalar_lea.vmem [#allocation16], %s1658_s29 }
  0xff   : > { %1738 = vmatprep.subr.bf16.mxu0 %v2292_v0  ;;  %1746 = vmatprep.subr.bf16.mxu1 %v2292_v0  ;;  %v1667_v17 = vld [vmem:[%s2966_s14] ss:$0 sm:$0xff]  ;;  %v839_v52 = vrot.slane %v2770_v51, %v838_v50  ;;  %s2970_s21 = sld [smem:[#allocation28_spill]]  ;;  %s1458_s15 = sshll.u32 %s595_s30, 4  ;;  %s2837_s15 = int_to_ptr.vmem [resolvable:$true] %s1458_s15 }
 0x100   : > { %s2183_s18 = scalar_lea.vmem %s2837_s15, 256  ;;  %s2300_s4 = smov [#allocation16]  }
 0x101   : > { %1727 = vmatmul.mubr.msk.bf16.vlgmr.msra.gmra.mrb[0].mxu0 %vm628_vm1, %v603_v3  ;;  %1735 = vmatmul.mubr.msk.bf16.vlgmr.msra.gmra.mrb[0].mxu1 %vm628_vm1, %v604_v9  ;;  %p2184_p1 = scmp.ne.s32.totalorder %s2837_s15, %s2183_s18  ;;  %s2187_s17 = sshll.u32 %s2300_s4, 4  ;;  %s2188_s17 = int_to_ptr.vmem [resolvable:$false] %s2187_s17 }
 0x102   : > { %1739 = vmatpush3.bf16.msra.mxu0 %v1938_v4  ;;  %1742 = vmatprep.mubr.msk.bf16.mxu0 %vm2293_vm0, %v2292_v0  ;;  %s2189_s5 = scalar_lea.vmem %s2188_s17, 512  ;;  %p2190_p13 = scmp.lt.s32.totalorder %s2837_s15, %s2188_s17 }
 0x103   : > { %1740 = vmatprep.subr.bf16.mxu0 %v2292_v0  ;;  %1748 = vmatprep.mubr.msk.bf16.mxu1 %vm2293_vm0, %v2292_v0  ;;  %s1693_s19 = sshll.u32 %s2968_s12, 8  ;;  %p2191_p11 = scmp.lt.s32.totalorder %s2189_s5, %s2183_s18 }
 0x105   : > { %p2972_p6 = scmp.ne.s32.totalorder %s2970_s21, 0  ;;  %p2192_p2 = por %p2191_p11, %p2190_p13 }
 0x106   : > { %1741 = vmatpush3.bf16.msra.mxu0 %v1939_v5 }
 0x107   : > { %1752 = vmatprep.subr.bf16.mxu0 %v2292_v0  ;;  %p2185_p8 = pnand %p2184_p1, %p2972_p6 }
 0x109   : > { %1743 = vmatmul.mubr.msk.bf16.vlgmr.msra.gmra.mrb[4].mxu0 %vm628_vm1, %v1940_v6  ;;  %p2186_p0 = pneg %p2185_p8 }
 0x10a   : > { %1754 = vmatprep.mubr.msk.bf16.mxu0 %vm2293_vm0, %v2292_v0 }
 0x10b   : > { %p2193_p4 = pnand %p2192_p2, %p2186_p0 }
 0x1d4   : > { %v666_v11 = vpop.f32.mrb[0].mxu0  ;;  %v735_v31 = vpop.f32.mrb[0].mxu1 }
 0x1d5   : > { %v667_v12 = vadd.f32 %v1659_v10, %v666_v11  ;;  %v1728_v13 = vpop.f32.mrb[1].mxu0  ;;  %v736_v32 = vadd.f32 %v1663_v30, %v735_v31  ;;  %v1736_v33 = vpop.f32.mrb[1].mxu1 }
 0x1d6   : > { %v669_v14 = vpop.f32.mrb[2].mxu0  ;;  %v738_v34 = vpop.f32.mrb[2].mxu1 }
 0x1d7   : > { %v672_v15 = vpack.c.bf16 %v667_v12, %v667_v12  ;;  %v1729_v16 = vpop.f32.mrb[3].mxu0  ;;  %v741_v35 = vpack.c.bf16 %v736_v32, %v736_v32  ;;  %v1737_v36 = vpop.f32.mrb[3].mxu1 }
 0x1d9   : > { %674 = vst.msk [vmem:[#allocation2] sm:$0xf] %vm673_vm2, %v672_v15  ;;  %742 = vst.msk [vmem:[#allocation3] sm:$0xf] %vm673_vm2, %v741_v35 }
 0x1dc   : > { %v811_v18 = vpop.f32.mrb[4].mxu0 }
 0x1dd   : > { %v812_v19 = vadd.f32 %v1667_v17, %v811_v18  ;;  %v1744_v20 = vpop.f32.mrb[5].mxu0 }
 0x1de   : > { %v814_v21 = vpop.f32.mrb[6].mxu0 }
 0x1df   : > { %v818_v22 = vmul.f32 0.35355338, %v812_v19  ;;  %v815_v23 = vadd.f32 %v1667_v17, %v814_v21  ;;  %v1745_v24 = vpop.f32.mrb[7].mxu0 }
 0x1e0   : > { %v821_v25 = vld [vmem:[#allocation2] sm:$0xf]  ;;  %v2745_v37 = vld [vmem:[#allocation3] sm:$0xf] }
 0x1e1   : > { %v819_v26 = vmul.f32 0.35355338, %v815_v23  ;;  %v846_v27 = vsel %vm841_vm3, %v821_v25, 0  ;;  %v1675_v28 = vcombine.low %v821_v25, %v821_v25  ;;  %v917_v38 = vsel %vm915_vm4, %v2745_v37, 0 }
 0x1e2   : > { %1747 = vmatpush3.bf16.xpose.msra.mxu1 %v846_v27  ;;  %1753 = vmatpush3.bf16.msra.mxu0 %v917_v38  ;;  %v1677_v32 = vcombine.low %v2745_v37, %v2745_v37 }
 0x1e3   : > { %v820_v29 = vpack.c.bf16 %v819_v26, %v818_v22  ;;  %1092 = vrot.lane.b32.xlu1 %v1675_v28, %s2294_s10  ;;  %966 = vrot.lane.b32.xlu0 %v1675_v28, %s2295_s16 }
 0x1e4   : > { %1758 = vmatprep.subr.bf16.mxu1 %v2292_v0  ;;  %1764 = vmatprep.subr.bf16.mxu0 %v2292_v0 }
 0x1e7   : > { %1090 = vrot.lane.b32.xlu1 %v820_v29, %s2294_s10  ;;  %961 = vrot.lane.b32.xlu0 %v820_v29, %s2295_s16 }
 0x1e9   : > { %1749 = vmatmul.mubr.msk.bf16.vlgmr.msra.gmra.mrb[4].mxu1 %vm841_vm3, %v820_v29 }
 0x1ea   : > { %1760 = vmatprep.mubr.msk.bf16.mxu1 %vm2293_vm0, %v2292_v0 }
 0x1eb   : > { %1213 = vrot.lane.b32.xlu1 %v820_v29, %s2296_s24  ;;  %1215 = vrot.lane.b32.xlu0 %v1675_v28, %s2296_s24 }
 0x255   : > { %v967_v39 = vpop.permute.xlu0 %966  ;;  %v1093_v41 = vpop.permute.xlu1 %1092 }
 0x256   : > { %v972_v40 = vsel %vm841_vm3, %v967_v39, 0  ;;  %v1098_v43 = vsel %vm841_vm3, %v1093_v41, 0 }
 0x257   : > { %1759 = vmatpush3.bf16.xpose.msra.mxu1 %v972_v40 }
 0x258   : > { %1770 = vmatprep.subr.bf16.mxu1 %v2292_v0 }
 0x259   : > { %v962_v42 = vpop.permute.xlu0 %961  ;;  %v1091_v45 = vpop.permute.xlu1 %1090 }
 0x25d   : > { %v1216_v44 = vpop.permute.xlu0 %1215  ;;  %v1214_v47 = vpop.permute.xlu1 %1213 }
 0x25e   : > { %1761 = vmatmul.mubr.msk.bf16.vlgmr.msra.gmra.mrb[8].mxu1 %vm841_vm3, %v962_v42  ;;  %v1221_v46 = vsel %vm841_vm3, %v1216_v44, 0 }
 0x25f   : > { %1771 = vmatpush3.bf16.xpose.msra.mxu1 %v1098_v43  ;;  %1772 = vmatprep.mubr.msk.bf16.mxu1 %vm2293_vm0, %v2292_v0 }
 0x260   : > { %1782 = vmatprep.subr.bf16.mxu1 %v2292_v0 }
 0x266   : > { %1773 = vmatmul.mubr.msk.bf16.vlgmr.msra.gmra.mrb[12].mxu1 %vm841_vm3, %v1091_v45 }
 0x267   : > { %1783 = vmatpush3.bf16.xpose.msra.mxu1 %v1221_v46  ;;  %1784 = vmatprep.mubr.msk.bf16.mxu1 %vm2293_vm0, %v2292_v0 }
 0x268   : > { %1794 = vmatprep.subr.bf16.mxu1 %v2292_v0 }
 0x26e   : > { %1785 = vmatmul.mubr.msk.bf16.vlgmr.msra.gmra.mrb[16].mxu1 %vm841_vm3, %v1214_v47 }
 0x26f   : > { %1798 = vmatprep.mubr.msk.bf16.mxu1 %vm2293_vm0, %v2292_v0 }
 0x2bc   : > { %v882_v53 = vpop.f32.mrb[4].mxu1 }
 0x2bd   : > { %v883_v54 = vadd.f32 %v882_v53, %v839_v52  ;;  %v1750_v55 = vpop.f32.mrb[5].mxu1 }
 0x2be   : > { %v885_v56 = vpop.f32.mrb[6].mxu1 }
 0x2bf   : > { %v886_v57 = vadd.f32 %v885_v56, %v839_v52  ;;  %v1751_v58 = vpop.f32.mrb[7].mxu1  ;;  %v889_v59 = vsel %vm841_vm3, %v883_v54, -inf }
 0x2c0   : > { %890 = vmax.xlane.f32.xlu0 %v889_v59 }
 0x2c1   : > { %v892_v60 = vsel %vm841_vm3, %v886_v57, -inf }
 0x2c2   : > { %893 = vmax.xlane.f32.xlu1 %v892_v60 }
 0x331   : > { %v1008_v61 = vpop.f32.mrb[8].mxu1 }
 0x332   : > { %v1009_v62 = vadd.f32 %v1008_v61, %v839_v52  ;;  %v1762_v63 = vpop.f32.mrb[9].mxu1 }
 0x333   : > { %v1011_v1 = vpop.f32.mrb[10].mxu1 }
 0x334   : > { %v1012_v2 = vadd.f32 %v1011_v1, %v839_v52  ;;  %v1763_v3 = vpop.f32.mrb[11].mxu1  ;;  %v1015_v4 = vsel %vm841_vm3, %v1009_v62, -inf }
 0x335   : > { %1016 = vmax.xlane.f32.xlu0 %v1015_v4 }
 0x336   : > { %v1018_v5 = vsel %vm841_vm3, %v1012_v2, -inf }
 0x339   : > { %1019 = vmax.xlane.f32.xlu0 %v1018_v5  ;;  %v1134_v6 = vpop.f32.mrb[12].mxu1 }
 0x33a   : > { %v1135_v7 = vadd.f32 %v1134_v6, %v839_v52  ;;  %v1774_v8 = vpop.f32.mrb[13].mxu1 }
 0x33b   : > { %v1137_v9 = vpop.f32.mrb[14].mxu1 }
 0x33c   : > { %v1138_v10 = vadd.f32 %v1137_v9, %v839_v52  ;;  %v1775_v11 = vpop.f32.mrb[15].mxu1  ;;  %v1141_v12 = vsel %vm841_vm3, %v1135_v7, -inf }
 0x33d   : > { %1142 = vmax.xlane.f32.xlu1 %v1141_v12 }
 0x33e   : > { %v1144_v13 = vsel %vm841_vm3, %v1138_v10, -inf }
 0x33f   : > { %1145 = vmax.xlane.f32.xlu0 %v1144_v13 }
 0x341   : > { %v1257_v14 = vpop.f32.mrb[16].mxu1 }
 0x342   : > { %v1258_v15 = vadd.f32 %v1257_v14, %v839_v52  ;;  %v1786_v16 = vpop.f32.mrb[17].mxu1 }
 0x343   : > { %v1260_v17 = vpop.f32.mrb[18].mxu1 }
 0x344   : > { %v1261_v18 = vadd.f32 %v1260_v17, %v839_v52  ;;  %v1787_v19 = vpop.f32.mrb[19].mxu1  ;;  %v1264_v20 = vsel %vm841_vm3, %v1258_v15, -inf }
 0x345   : > { %1265 = vmax.xlane.f32.xlu1 %v1264_v20 }
 0x346   : > { %v1267_v21 = vsel %vm841_vm3, %v1261_v18, -inf }
 0x347   : > { %1268 = vmax.xlane.f32.xlu0 %v1267_v21 }
 0x34d   : > { %v891_v22 = vpop.xlane.xlu0 %890 }
 0x34e   : > { %v895_v23 = vsub.f32 %v883_v54, %v891_v22 }
 0x34f   : > { %v894_v24 = vpop.xlane.xlu1 %893 }
 0x350   : > { %v897_v25 = vmul.f32 1.442695, %v895_v23  ;;  %v896_v26 = vsub.f32 %v886_v57, %v894_v24 }
 0x352   : > { %1947 = vpow2.f32 %v897_v25  ;;  %v899_v27 = vmul.f32 1.442695, %v896_v26 }
 0x354   : > { %1949 = vpow2.f32 %v899_v27 }
 0x35c   : > { %v1948_v28 = vpop.eup %1947 }
 0x35d   : > { %v901_v29 = vsel %vm841_vm3, %v1948_v28, 0.0 }
 0x35e   : > { %v1950_v30 = vpop.eup %1949  ;;  %902 = vadd.xlane.f32.xlu1 %v901_v29 }
 0x35f   : > { %v904_v31 = vsel %vm841_vm3, %v1950_v30, 0.0 }
 0x360   : > { %905 = vadd.xlane.f32.xlu0 %v904_v31 }
 0x36f   : > { %1041 = vrot.lane.b32.xlu1 %v1677_v32, %s2295_s16 }
 0x3c2   : > { %v1017_v33 = vpop.xlane.xlu0 %1016 }
 0x3c3   : > { %v1021_v34 = vsub.f32 %v1009_v62, %v1017_v33 }
 0x3c5   : > { %v1023_v35 = vmul.f32 1.442695, %v1021_v34 }
 0x3c6   : > { %v1020_v36 = vpop.xlane.xlu0 %1019 }
 0x3c7   : > { %1951 = vpow2.f32 %v1023_v35  ;;  %v1022_v38 = vsub.f32 %v1012_v2, %v1020_v36 }
 0x3c9   : > { %v1025_v39 = vmul.f32 1.442695, %v1022_v38 }
 0x3ca   : > { %v1143_v40 = vpop.xlane.xlu1 %1142 }
 0x3cb   : > { %1953 = vpow2.f32 %v1025_v39  ;;  %v1147_v41 = vsub.f32 %v1135_v7, %v1143_v40 }
 0x3cc   : > { %v1146_v42 = vpop.xlane.xlu0 %1145 }
 0x3cd   : > { %v1149_v43 = vmul.f32 1.442695, %v1147_v41  ;;  %v1148_v44 = vsub.f32 %v1138_v10, %v1146_v42 }
 0x3cf   : > { %1955 = vpow2.f32 %v1149_v43  ;;  %v1151_v45 = vmul.f32 1.442695, %v1148_v44 }
 0x3d1   : > { %v1952_v46 = vpop.eup %1951  ;;  %1957 = vpow2.f32 %v1151_v45  ;;  %v1945_v45 = vld [vmem:[%s2967_s13] sm:$0xff]  }
 0x3d2   : > { %v1266_v37 = vpop.xlane.xlu1 %1265  ;;  %v1027_v47 = vsel %vm841_vm3, %v1952_v46, 0.0  ;;  %1795 = vmatpush3.bf16.msra.mxu1 %v1945_v45 }
 0x3d3   : > { %v1270_v48 = vsub.f32 %v1258_v15, %v1266_v37  ;;  %1028 = vadd.xlane.f32.xlu1 %v1027_v47  ;;  %1796 = vmatprep.subr.bf16.mxu1 %v2292_v0 }
 0x3d4   : > { %v1269_v52 = vpop.xlane.xlu0 %1268 }
 0x3d5   : > { %v1954_v53 = vpop.eup %1953  ;;  %v1272_v54 = vmul.f32 1.442695, %v1270_v48  ;;  %v1271_v55 = vsub.f32 %v1261_v18, %v1269_v52  ;;  %v1946_v52 = vld [vmem:[%s2967_s13 + $0x8] sm:$0xff]  }
 0x3d6   : > { %v1030_v56 = vsel %vm841_vm3, %v1954_v53, 0.0  ;;  %1797 = vmatpush3.bf16.msra.mxu1 %v1946_v52 }
 0x3d7   : > { %1959 = vpow2.f32 %v1272_v54  ;;  %v1274_v57 = vmul.f32 1.442695, %v1271_v55  ;;  %1031 = vadd.xlane.f32.xlu0 %v1030_v56 }
 0x3d9   : > { %v1956_v58 = vpop.eup %1955  ;;  %1961 = vpow2.f32 %v1274_v57 }
 0x3da   : > { %v1153_v59 = vsel %vm841_vm3, %v1956_v58, 0.0 }
 0x3db   : > { %v1958_v60 = vpop.eup %1957  ;;  %1154 = vadd.xlane.f32.xlu1 %v1153_v59 }
 0x3dc   : > { %v1156_v61 = vsel %vm841_vm3, %v1958_v60, 0.0 }
 0x3dd   : > { %1157 = vadd.xlane.f32.xlu0 %v1156_v61  ;;  %v829_v61 = vsel %vm828_vm5, %v2770_v51, -inf }
 0x3e1   : > { %v1960_v62 = vpop.eup %1959 }
 0x3e2   : > { %v1276_v63 = vsel %vm841_vm3, %v1960_v62, 0.0 }
 0x3e3   : > { %v1962_v1 = vpop.eup %1961  ;;  %1277 = vadd.xlane.f32.xlu1 %v1276_v63 }
 0x3e4   : > { %v1279_v2 = vsel %vm841_vm3, %v1962_v1, 0.0 }
 0x3e5   : > { %1280 = vadd.xlane.f32.xlu0 %v1279_v2 }
 0x3eb   : > { %v903_v3 = vpop.xlane.xlu1 %902 }
 0x3ec   : > { %1963 = vrcp.f32 %v903_v3 }
 0x3ed   : > { %v906_v4 = vpop.xlane.xlu0 %905 }
 0x3ee   : > { %1965 = vrcp.f32 %v906_v4 }
 0x3ef   : > { %v1042_v9 = vpop.permute.xlu1 %1041 }
 0x3f0   : > { %v1047_v11 = vsel %vm915_vm4, %v1042_v9, 0 }
 0x3f4   : > { %1287 = vrot.lane.b32.xlu1 %v1677_v32, %s2296_s24  ;;  %s1443_s24 = scalar_lea.sflag [#allocation6], %s2666_s11 }
 0x3f6   : > { %v1964_v5 = vpop.eup %1963 }
 0x3f7   : > { %v909_v7 = vmul.f32 %v1964_v5, %v1948_v28 }
 0x3f8   : > { %v1966_v6 = vpop.eup %1965 }
 0x3f9   : > { %v910_v8 = vmul.f32 %v1966_v6, %v1950_v30 }
 0x3fb   : > { %1164 = vrot.lane.b32.xlu0 %v1677_v32, %s2294_s10  ;;  %v911_v10 = vpack.c.bf16 %v910_v8, %v909_v7  ;;  %s2971_s10 = sld [smem:[#allocation37_spill]] }
 0x3fd   : > { %1755 = vmatmul.mubr.msk.bf16.vlgmr.msra.gmra.mrb[8].mxu0 %vm841_vm3, %v911_v10 }
 0x3fe   : > { %1765 = vmatpush3.bf16.msra.mxu0 %v1047_v11  ;;  %1766 = vmatprep.mubr.msk.bf16.mxu0 %vm2293_vm0, %v2292_v0 }
 0x3ff   : > { %1776 = vmatprep.subr.bf16.mxu0 %v2292_v0 }
 0x401   : > { %s2834_s16 = scalar_lea.hbm %s2971_s10, %s1693_s19 }
 0x460   : > { %v1029_v12 = vpop.xlane.xlu1 %1028 }
 0x461   : > { %1967 = vrcp.f32 %v1029_v12 }
 0x464   : > { %v1032_v13 = vpop.xlane.xlu0 %1031 }
 0x465   : > { %1969 = vrcp.f32 %v1032_v13 }
 0x468   : > { %v1155_v14 = vpop.xlane.xlu1 %1154 }
 0x469   : > { %1971 = vrcp.f32 %v1155_v14 }
 0x46a   : > { %v1158_v15 = vpop.xlane.xlu0 %1157 }
 0x46b   : > { %1973 = vrcp.f32 %v1158_v15  ;;  %v1968_v16 = vpop.eup %1967 }
 0x46c   : > { %v1035_v18 = vmul.f32 %v1968_v16, %v1952_v46 }
 0x46f   : > { %v1970_v17 = vpop.eup %1969 }
 0x470   : > { %v1036_v19 = vmul.f32 %v1970_v17, %v1954_v53  ;;  %v1278_v20 = vpop.xlane.xlu1 %1277 }
 0x471   : > { %1975 = vrcp.f32 %v1278_v20 }
 0x472   : > { %v1281_v21 = vpop.xlane.xlu0 %1280  ;;  %v1037_v22 = vpack.c.bf16 %v1036_v19, %v1035_v18  ;;  %v1686_v18 = vld [vmem:[%s2969_s8] ss:$0 sm:$0xff] }
 0x473   : > { %1977 = vrcp.f32 %v1281_v21  ;;  %v1972_v23 = vpop.eup %1971 }
 0x474   : > { %1767 = vmatmul.mubr.msk.bf16.vlgmr.msra.gmra.mrb[12].mxu0 %vm841_vm3, %v1037_v22  ;;  %v1161_v28 = vmul.f32 %v1972_v23, %v1956_v58  ;;  %v1288_v29 = vpop.permute.xlu1 %1287 }
 0x475   : > { %v1974_v24 = vpop.eup %1973  ;;  %1778 = vmatprep.mubr.msk.bf16.mxu0 %vm2293_vm0, %v2292_v0  ;;  %v1293_v32 = vsel %vm915_vm4, %v1288_v29, 0 }
 0x476   : > { %v1162_v25 = vmul.f32 %v1974_v24, %v1958_v60  ;;  %v1165_v26 = vpop.permute.xlu0 %1164 }
 0x477   : > { %v1170_v27 = vsel %vm915_vm4, %v1165_v26, 0 }
 0x478   : > { %1777 = vmatpush3.bf16.msra.mxu0 %v1170_v27  ;;  %v1163_v30 = vpack.c.bf16 %v1162_v25, %v1161_v28 }
 0x479   : > { %1788 = vmatprep.subr.bf16.mxu0 %v2292_v0 }
 0x47b   : > { %v1976_v31 = vpop.eup %1975 }
 0x47c   : > { %1779 = vmatmul.mubr.msk.bf16.vlgmr.msra.gmra.mrb[16].mxu0 %vm841_vm3, %v1163_v30  ;;  %v1284_v35 = vmul.f32 %v1976_v31, %v1960_v62 }
 0x47d   : > { %v1978_v33 = vpop.eup %1977  ;;  %1789 = vmatpush3.bf16.msra.mxu0 %v1293_v32  ;;  %1790 = vmatprep.mubr.msk.bf16.mxu0 %vm2293_vm0, %v2292_v0 }
 0x47e   : > { %v1285_v34 = vmul.f32 %v1978_v33, %v1962_v1 }
 0x480   : > { %v1286_v36 = vpack.c.bf16 %v1285_v34, %v1284_v35 }
 0x484   : > { %1791 = vmatmul.mubr.msk.bf16.vlgmr.msra.gmra.mrb[20].mxu0 %vm841_vm3, %v1286_v36 }
 0x4d0   : > { %v953_v38 = vpop.f32.mrb[8].mxu0 }
 0x4d1   : > { %v1756_v39 = vpop.f32.mrb[9].mxu0 }
 0x4d2   : > { %v956_v40 = vpop.f32.mrb[10].mxu0 }
 0x4d3   : > { %v1757_v41 = vpop.f32.mrb[11].mxu0 }
 0x547   : > { %v1083_v42 = vpop.f32.mrb[12].mxu0 }
 0x548   : > { %v1768_v43 = vpop.f32.mrb[13].mxu0 }
 0x549   : > { %v1086_v44 = vpop.f32.mrb[14].mxu0 }
 0x54a   : > { %v1921_v46 = vpack.i.bf16 %v1086_v44, %v1083_v42  ;;  %v1769_v37 = vpop.f32.mrb[15].mxu0 }
 0x54c   : > { %1922 = vrot.lane.b32.xlu1 %v1921_v46, %s2297_s28 }
 0x54f   : > { %v1206_v47 = vpop.f32.mrb[16].mxu0 }
 0x550   : > { %v1780_v48 = vpop.f32.mrb[17].mxu0 }
 0x551   : > { %v1209_v53 = vpop.f32.mrb[18].mxu0 }
 0x552   : > { %v1926_v54 = vpack.i.bf16 %v1209_v53, %v1206_v47  ;;  %v1781_v55 = vpop.f32.mrb[19].mxu0 }
 0x554   : > { %1927 = vrot.lane.b32.xlu0 %v1926_v54, %s2298_s1 }
 0x557   : > { %v1329_v56 = vpop.f32.mrb[20].mxu0 }
 0x558   : > { %v1792_v57 = vpop.f32.mrb[21].mxu0 }
 0x559   : > { %v1332_v58 = vpop.f32.mrb[22].mxu0 }
 0x55a   : > { %v1931_v59 = vpack.i.bf16 %v1332_v58, %v1329_v56  ;;  %v1793_v60 = vpop.f32.mrb[23].mxu0 }
 0x55c   : > { %1932 = vrot.lane.b32.xlu1 %v1931_v59, %s2299_s7 }
 0x573   : > { %830 = vmax.xlane.f32.xlu0 %v829_v61 }
 0x5be   : > { %v1923_v62 = vpop.permute.xlu1 %1922 }
 0x5bf   : > { %v1925_v1 = vunpack.i.h.bf16 %v1923_v62  ;;  %v1924_v2 = vunpack.i.l.bf16 %v1923_v62 }
 0x5c1   : > { %v1361_v6 = vsel %vm841_vm3, %v956_v40, %v1925_v1  ;;  %v1360_v7 = vsel %vm841_vm3, %v953_v38, %v1924_v2 }
 0x5c6   : > { %v1928_v63 = vpop.permute.xlu0 %1927 }
 0x5c7   : > { %v1930_v3 = vunpack.i.h.bf16 %v1928_v63  ;;  %v1929_v4 = vunpack.i.l.bf16 %v1928_v63 }
 0x5c9   : > { %v1364_v10 = vsel %vm1362_vm6, %v1361_v6, %v1930_v3  ;;  %v1363_v51 = vsel %vm1362_vm6, %v1360_v7, %v1929_v4 }
 0x5ce   : > { %v1933_v5 = vpop.permute.xlu1 %1932 }
 0x5cf   : > { %v1935_v8 = vunpack.i.h.bf16 %v1933_v5  ;;  %v1934_v9 = vunpack.i.l.bf16 %v1933_v5 }
 0x5d1   : > { %v1367_v11 = vsel %vm1365_vm7, %v1364_v10, %v1935_v8  ;;  %v1366_v12 = vsel %vm1365_vm7, %v1363_v51, %v1934_v9 }
 0x5d2   : > { %v1368_v13 = vpack.c.bf16 %v1367_v11, %v1366_v12 }
 0x5d4   : > { %1799 = vmatmul.mubr.msk.bf16.vlgmr.msra.gmra.mrb[20].mxu1 %vm628_vm1, %v1368_v13 }
 0x600   : > { %v831_v14 = vpop.xlane.xlu0 %830 }
 0x601   : > { %vm832_vm8 = vcmp.eq.f32.partialorder %v831_v14, 0.0 }
 0x602   : > { %v1672_v15 = vsel %vm832_vm8, 1.0, %v2292_v0 }
 0x603   : > { %v1428_v16 = vrot.slane %v1672_v15, %v838_v50 }
 0x6a7   : > { %v1418_v17 = vpop.f32.mrb[20].mxu1 }
 0x6a8   : > { %v1429_v19 = vmul.f32 %v1428_v16, %v1418_v17  ;;  %v1800_v20 = vpop.f32.mrb[21].mxu1 }
 0x6a9   : > { %v1421_v21 = vpop.f32.mrb[22].mxu1 }
 0x6aa   : > { %v1438_v22 = vadd.f32 %v1686_v18, %v1429_v19  ;;  %v1430_v23 = vmul.f32 %v1428_v16, %v1421_v21  ;;  %v1801_v0 = vpop.f32.mrb[23].mxu1 }
 0x6ac   : > { %1440 = vst.msk [vmem:[%s595_s30] sm:$0xff] %vm628_vm1, %v1438_v22  ;;  %v1439_v49 = vadd.f32 %v1686_v18, %v1430_v23 }
 0x6ae   : > { %1441 = vst.msk [vmem:[%s595_s30 + $0x8] sm:$0xff] %vm628_vm1, %v1439_v49 }
 0x6af   : > { %2196 = shalt.err (!%p2193_p4)
}
 0x6b0   : > { %s2197_s1 = scalar_lea.hbm %s2834_s16, 256  ;;  %s2201_s29 = scalar_lea.hbm %s2971_s10, 768 }
 0x6b1   : > { %p2198_p9 = scmp.ne.s32.totalorder %s2834_s16, %s2197_s1  ;;  %p2202_p10 = scmp.lt.u32.totalorder %s2834_s16, %s2971_s10 }
 0x6b2   : > { %p2203_p3 = scmp.lt.u32.totalorder %s2201_s29, %s2197_s1  ;;  %p2205_p1 = scmp.lt.u32.totalorder %s2197_s1, %s2834_s16 }
 0x6b3   : > { %p2199_p7 = pnand %p2198_p9, %p2972_p6 }
 0x6b4   : > { %p2204_p12 = por %p2203_p3, %p2202_p10 }
 0x6b5   : > { %p2200_p5 = pneg %p2199_p7 }
 0x6b6   : > { %p2206_p8 = por %p2205_p1, %p2204_p12 }
 0x6b8   : > { %p2207_p0 = pnand %p2206_p8, %p2200_p5 }
 0x6ba   : > { %2210 = shalt.err (!%p2207_p0)
}
 0x6bb   : > { %s2301_s8 = smov 128  }
 0x6bc   : > { %1822 = dma.vmem_to_hbm [thread:$0]  (%p2972_p6), %s2837_s15, 256, %s2834_s16, %s1443_s24, %s2301_s8, %s2301_s8, %s2297_s28  }
 0x6bd PF: > { %s2973_s19 = sld [smem:[#allocation23_spill]]  ;;  %s2974_s30 = sld [smem:[#allocation26_spill]] }
 0x6be   : > { %p1858_p13 = scmp.ge.s32.totalorder %s2281_s26, 2 }
 0x6c3   : > { %s1473_s20 = sand.u32 1, %s2973_s19   ;;  %p2975_p11 = scmp.ne.s32.totalorder %s2974_s30, 0 }
 0x6c4   : > { %s1474_s14 = scalar_lea.sflag [#allocation6], %s1473_s20 }
 0x6c5   : > { %p1848_p2 = pnand %p1858_p13, %p2975_p11 }
 0x6c7   : > { %2256 = dma.done.wait (!%p1848_p2), %s1474_s14, 256  }
 0x6c8   : > { %2258 = vsyncadd (!%p1848_p2), %s1474_s14, 4294967040  ;;  %s35_s26 = sadd.s32 1, %s2281_s26   ;;  %s2976_s18 = sld [smem:[#allocation24_spill]] }
 0x6c9   : > { %p32_p4 = scmp.ge.s32.totalorder %s35_s26, 5   ;;  %s2977_s23 = sld [smem:[#allocation29_spill]] }
 0x6ca   : > { %s2978_s11 = sld [smem:[#allocation27_spill]]  ;;  %s2979_s21 = smov %s2265_s22 }
 0x6cb   : > { %s2981_s24 = smov %s2277_s25  ;;  %34 = sbr.rel (!%p32_p4) target bundleno = 20 (0x14), region = 166 }
 0x6ce   : > { %s2980_s22 = smov %s2976_s18 }
 0x6d0   : > { %s2982_s25 = smov %s2978_s11 }
 0x6d2   :  { %1479 = vsyncpa [#allocation5], 1 }
 0x6d3   :  { %1481 = vsyncpa [#allocation5 + $0x1], 1 }
 0x6d4   :  { %1482 = vsyncpa [#allocation8], 1 }
 0x6d5   :  { %1484 = vsyncpa [#allocation8 + $0x1], 1 }
 0x6d6   :  { %1485 = vsyncpa [#allocation11], 1 }
 0x6d7   :  { %1487 = vsyncpa [#allocation11 + $0x1], 1 }
 0x6d8   :  { %1488 = vsyncpa [#allocation14], 1 }
 0x6d9   :  { %1489 = vsyncpa [#allocation6], 1 }
 0x6da   :  { %1491 = vsyncpa [#allocation6 + $0x1], 1 }

// kernel: tpu_custom_call.1
= control target key start
LH: loop header
LB: loop body
LE: loop exit
PB: predicated region body
PF: predicated region fallthrough
CT: control target
= control target key end

     0   :  { %s2887_s0 = inlined_call_operand.hbm [shape: bf16[3,16,32], index: 0, kind: input, shape index: {}]   ;;  %s2888_s1 = inlined_call_operand.hbm [shape: bf16[3,8,32], index: 1, kind: input, shape index: {}]   ;;  %s2889_s2 = inlined_call_operand.hbm [shape: bf16[3,8,32], index: 2, kind: input, shape index: {}]   ;;  %s2890_s3 = inlined_call_operand.hbm [shape: f32[3,1,8], index: 3, kind: input, shape index: {}]   ;;  %s2891_s4 = inlined_call_operand.hbm [shape: bf16[32,32], index: 4, kind: input, shape index: {}]   ;;  %s2892_s5 = inlined_call_operand.vmem [shape: f32[1,32], index: 5, kind: input, shape index: {}]   ;;  %s2893_s6 = inlined_call_operand.vmem [shape: bf16[32,32], index: 6, kind: input, shape index: {}]   ;;  %s2894_s7 = inlined_call_operand.vmem [shape: f32[1,32], index: 7, kind: input, shape index: {}]   ;;  %s2895_s8 = inlined_call_operand.hbm [shape: bf16[32,32], index: 8, kind: input, shape index: {}]   ;;  %s2896_s9 = inlined_call_operand.hbm [shape: f32[1,32], index: 9, kind: input, shape index: {}]   ;;  %s2897_s10 = inlined_call_operand.vmem [shape: bf16[32,32], index: 10, kind: input, shape index: {}]   ;;  %s2898_s11 = inlined_call_operand.vmem [shape: f32[1,32], index: 11, kind: input, shape index: {}]   ;;  %s2899_s12 = inlined_call_operand.hbm [shape: f32[3,16,32], index: 12, kind: output, shape index: {}]  }
   0x1   :  { %2922 = sst [smem:[#allocation30_spill]] %s2888_s1 }
   0x2   :  { %2923 = sst [smem:[#allocation31_spill]] %s2891_s4 }
   0x3   :  { %2924 = sst [smem:[#allocation32_spill]] %s2892_s5 }
   0x4   :  { %2925 = sst [smem:[#allocation33_spill]] %s2894_s7 }
   0x5   :  { %2926 = sst [smem:[#allocation34_spill]] %s2895_s8 }
   0x6   :  { %2927 = sst [smem:[#allocation35_spill]] %s2897_s10 }
   0x7   :  { %2928 = sst [smem:[#allocation36_spill]] %s2898_s11 }
   0x8   :  { %2929 = sst [smem:[#allocation37_spill]] %s2899_s12 }
   0x9   :  { %17 = vsyncpa [#allocation5], 0 }
   0xa   :  { %19 = vsyncpa [#allocation5 + $0x1], 0 }
   0xb   :  { %20 = vsyncpa [#allocation8], 0 }
   0xc   :  { %22 = vsyncpa [#allocation8 + $0x1], 0 }
   0xd   :  { %23 = vsyncpa [#allocation11], 0 }
   0xe   :  { %25 = vsyncpa [#allocation11 + $0x1], 0 }
   0xf   :  { %26 = vsyncpa [#allocation14], 0 }
  0x10   :  { %27 = vsyncpa [#allocation6], 0 }
  0x11   :  { %29 = vsyncpa [#allocation6 + $0x1], 0  ;;  %s2367_s21 = smov 0   ;;  %s2369_s22 = smov 0  }
  0x12   :  { %s2371_s23 = smov 0   ;;  %s2373_s24 = smov 0  }
  0x13   :  { %s2375_s25 = smov 0   ;;  %s2377_s26 = smov 0  }
  0x14 LB: > { %2930 = sst [smem:[#allocation23_spill]] %s2261_s21  ;;  %s2398_s27 = sadd.s32 4294967295, %s2281_s26   ;;  %s2281_s26 = sphi %s2377_s26, %s35_s26   ;;  %s2277_s25 = sphi %s2375_s25, %s2982_s25   ;;  %s2273_s24 = sphi %s2373_s24, %s2981_s24   ;;  %s2269_s23 = sphi %s2371_s23, %s2977_s23   ;;  %s2265_s22 = sphi %s2369_s22, %s2980_s22   ;;  %s2261_s21 = sphi %s2367_s21, %s2979_s21  }
  0x15   : > { %2931 = sst [smem:[#allocation24_spill]] %s2269_s23  ;;  %s1637_s28 = sadd.s32 4294967294, %s2281_s26  }
  0x16   : > { %2932 = sst [smem:[#allocation25_spill]] %s2273_s24  ;;  %p69_p0 = scmp.ne.s32.totalorder %s2265_s22, %s2261_s21 }
  0x17   : > { %p2903_p1 = scmp.eq.s32.totalorder %s2398_s27, 0  ;;  %p347_p3 = scmp.eq.s32.totalorder %s1637_s28, 2 }
  0x18   : > { %p1638_p5 = scmp.ge.s32.totalorder %s2281_s26, 1  ;;  %p354_p7 = scmp.lt.s32.totalorder %s2281_s26, 4 }
  0x19   : > { %p2407_p4 = por %p2903_p1, %p69_p0  ;;  %p2412_p6 = por %p347_p3, %p69_p0 }
  0x1a   : > { %p2417_p8 = pnand %p1638_p5, %p354_p7  ;;  %s2283_s14 = smov [#allocation12]  }
  0x1b   : > { %s2933_s29 = scalar_select %p2407_p4, 1, 0 }
  0x1c   : > { %s2934_s30 = scalar_select %p2412_p6, 1, 0 }
  0x1d   : > { %s2936_s13 = scalar_select %p2417_p8, 1, 0 }
  0x1e   : > { %2935 = sst [smem:[#allocation26_spill]] %s2934_s30  ;;  %s366_s15 = sshll.u32 %s2283_s14, 4  ;;  %s367_s15 = int_to_ptr.vmem [resolvable:$true] %s366_s15 }
  0x1f   : > { %p1824_p9 = pneg %p2417_p8  ;;  %s2284_s17 = smov [#allocation13]  }
  0x20   : > { %s388_s18 = sshll.u32 %s2284_s17, 4  ;;  %s2938_s4 = sld [smem:[#allocation31_spill]]  ;;  %s2429_s18 = int_to_ptr.vmem [resolvable:$true] %s388_s18 }
  0x21   : > { %p2425_p10 = pnand %p1824_p9, %p2903_p1 }
  0x23   : > { %s2937_s16 = scalar_select %p2425_p10, 1, 0 }
  0x24   : > { %p2439_p12 = pneg %p2425_p10 }
  0x26   : > { %s1979_s28 = scalar_lea.hbm %s2938_s4, 256 }
  0x27   : > { %p1980_p11 = scmp.ne.s32.totalorder %s2938_s4, %s1979_s28  ;;  %p1986_p3 = scmp.lt.u32.totalorder %s1979_s28, %s2938_s4 }
  0x28   : > { %s2939_s14 = scalar_select %p2439_p12, 1, 0 }
  0x29   : > { %p1982_p13 = pnand %p2439_p12, %p1980_p11 }
  0x2b   : > { %p1983_p0 = pneg %p1982_p13 }
  0x2d   : > { %p1988_p5 = pnand %p1986_p3, %p1983_p0 }
  0x2f   : > { %1991 = shalt.err (!%p1988_p5)
}
  0x30   : > { %s1992_s19 = scalar_lea.vmem %s367_s15, 256  ;;  %p2000_p2 = scmp.lt.s32.totalorder %s367_s15, %s367_s15 }
  0x31   : > { %p1993_p7 = scmp.ne.s32.totalorder %s367_s15, %s1992_s19  ;;  %p2001_p6 = scmp.lt.s32.totalorder %s1992_s19, %s1992_s19 }
  0x33   : > { %p1995_p9 = pnand %p1993_p7, %p2439_p12  ;;  %p2002_p4 = por %p2001_p6, %p2000_p2 }
  0x35   : > { %p1996_p1 = pneg %p1995_p9 }
  0x37   : > { %p2003_p8 = pnand %p2002_p4, %p1996_p1 }
  0x39   : > { %2006 = shalt.err (!%p2003_p8)
}
  0x3a   : > { %s2907_s21 = smov 64   ;;  %s2908_s30 = smov 4  }
  0x3b   : > { %1827 = dma.hbm_to_vmem [thread:$0]  (!%p2425_p10), %s2938_s4, 256, %s367_s15, [#allocation11], %s2907_s21, %s2907_s21, %s2908_s30  }
  0x3c   : > { %s2940_s8 = sld [smem:[#allocation34_spill]] }
  0x42   : > { %s2007_s11 = scalar_lea.hbm %s2940_s8, 256 }
  0x43   : > { %p2008_p1 = scmp.ne.s32.totalorder %s2940_s8, %s2007_s11  ;;  %p2014_p6 = scmp.lt.u32.totalorder %s2007_s11, %s2940_s8 }
  0x45   : > { %p2010_p2 = pnand %p2008_p1, %p2439_p12 }
  0x47   : > { %p2011_p4 = pneg %p2010_p2 }
  0x49   : > { %p2016_p8 = pnand %p2014_p6, %p2011_p4 }
  0x4b   : > { %2019 = shalt.err (!%p2016_p8)
}
  0x4c   : > { %s2020_s15 = scalar_lea.vmem %s2429_s18, 256  ;;  %p2028_p3 = scmp.lt.s32.totalorder %s2429_s18, %s2429_s18 }
  0x4d   : > { %p2021_p11 = scmp.ne.s32.totalorder %s2429_s18, %s2020_s15  ;;  %p2029_p5 = scmp.lt.s32.totalorder %s2020_s15, %s2020_s15 }
  0x4f   : > { %p2023_p13 = pnand %p2021_p11, %p2439_p12  ;;  %p2030_p7 = por %p2029_p5, %p2028_p3 }
  0x51   : > { %p2024_p0 = pneg %p2023_p13 }
  0x53   : > { %p2031_p9 = pnand %p2030_p7, %p2024_p0 }
  0x55   : > { %2034 = shalt.err (!%p2031_p9)
}
  0x56   : > { %1830 = dma.hbm_to_vmem [thread:$0]  (!%p2425_p10), %s2940_s8, 256, %s2429_s18, [#allocation14], %s2907_s21, %s2907_s21, %s2908_s30  }
  0x57   : > { %s47_s11 = sadd.s32 1, %s2277_s25  ;;  %s56_s24 = sadd.s32 1, %s2269_s23 }
  0x58   : > { %p49_p1 = scmp.ge.s32.totalorder %s47_s11, 3  ;;  %p63_p2 = scmp.ne.s32.totalorder %s2269_s23, %s2265_s22 }
  0x59   : > { %p64_p4 = scmp.eq.s32.totalorder %s2281_s26, 0  ;;  %p1854_p6 = scmp.lt.s32.totalorder %s2281_s26, 3 }
  0x5a   : > { %s2984_s11 = smov (%p49_p1, %s47_s11), 0  ;;  %p2942_p11 = scmp.eq.s32.totalorder %s2398_s27, 2 }
  0x5b   : > { %2941 = sst [smem:[#allocation27_spill]] %s2984_s11  ;;  %p65_p8 = por %p64_p4, %p63_p2 }
  0x5c   : > { %p2494_p13 = por %p2942_p11, %p63_p2  ;;  %s51_s18 = ssub.s32 %s2277_s25, %s2984_s11 }
  0x5d   : > { %s2501_s20 = sand.u32 1, %s2269_s23   ;;  %p54_p0 = scmp.eq.s32.totalorder %s51_s18, 0 }
  0x5e   : > { %s2943_s12 = scalar_select %p2494_p13, 1, 0 }
  0x5f   : > { %p2503_p3 = pnand %p1854_p6, %p65_p8  ;;  %s2912_s17 = sand.u32 1, %s2281_s26  }
  0x60   : > { %2944 = sst [smem:[#allocation28_spill]] %s2943_s12  ;;  %s2910_s19 = sshll.u32 %s2501_s20, 2 }
  0x61   : > { %s2945_s28 = scalar_select %p2503_p3, 1, 0 }
  0x62   : > { %s2510_s15 = scalar_select %p54_p0, %s2269_s23, %s56_s24  }
  0x63   : > { %s2911_s5 = sshll.u32 %s2277_s25, 6  ;;  %s2947_s1 = sld [smem:[#allocation30_spill]] }
  0x64   : > { %2946 = sst [smem:[#allocation29_spill]] %s2510_s15  ;;  %s446_s18 = scalar_lea.vmem [#allocation7], %s2910_s19 }
  0x65   : > { %s453_s4 = sshll.u32 %s446_s18, 4  ;;  %s2526_s8 = scalar_lea.sflag [#allocation8], %s2912_s17  ;;  %s2522_s4 = int_to_ptr.vmem [resolvable:$true] %s453_s4 }
  0x66   : > { %p2532_p7 = pneg %p2503_p3 }
  0x69   : > { %s2518_s30 = scalar_lea.hbm %s2947_s1, %s2911_s5  ;;  %s2040_s18 = scalar_lea.hbm %s2947_s1, 192 }
  0x6a   : > { %s2035_s24 = scalar_lea.hbm %s2518_s30, 64  ;;  %p2041_p2 = scmp.lt.u32.totalorder %s2518_s30, %s2947_s1 }
  0x6b   : > { %p2036_p5 = scmp.ne.s32.totalorder %s2518_s30, %s2035_s24  ;;  %p2042_p4 = scmp.lt.u32.totalorder %s2040_s18, %s2035_s24 }
  0x6c   : > { %p2044_p8 = scmp.lt.u32.totalorder %s2035_s24, %s2518_s30 }
  0x6d   : > { %p2038_p9 = pnand %p2532_p7, %p2036_p5  ;;  %p2043_p6 = por %p2042_p4, %p2041_p2 }
  0x6f   : > { %p2039_p1 = pneg %p2038_p9  ;;  %p2045_p11 = por %p2044_p8, %p2043_p6 }
  0x71   : > { %p2046_p0 = pnand %p2045_p11, %p2039_p1 }
  0x73   : > { %2049 = shalt.err (!%p2046_p0)
}
  0x74   : > { %s2050_s17 = scalar_lea.vmem %s2522_s4, 64  ;;  %s2287_s21 = smov [#allocation7]  }
  0x75   : > { %p2051_p5 = scmp.ne.s32.totalorder %s2522_s4, %s2050_s17  ;;  %s2055_s10 = sshll.u32 %s2287_s21, 4  ;;  %s2056_s10 = int_to_ptr.vmem [resolvable:$false] %s2055_s10 }
  0x76   : > { %s2057_s19 = scalar_lea.vmem %s2056_s10, 128  ;;  %p2058_p10 = scmp.lt.s32.totalorder %s2522_s4, %s2056_s10 }
  0x77   : > { %p2053_p9 = pnand %p2051_p5, %p2532_p7  ;;  %p2059_p12 = scmp.lt.s32.totalorder %s2057_s19, %s2050_s17 }
  0x79   : > { %p2054_p13 = pneg %p2053_p9  ;;  %p2060_p2 = por %p2059_p12, %p2058_p10 }
  0x7b   : > { %p2061_p4 = pnand %p2060_p2, %p2054_p13 }
  0x7d   : > { %2064 = shalt.err (!%p2061_p4)
}
  0x7e   : > { %1840 = dma.hbm_to_vmem [thread:$0]  (!%p2503_p3), %s2518_s30, 64, %s2522_s4, %s2526_s8  }
  0x7f   : > { %s2949_s5 = sshll.u32 %s2277_s25, 6  ;;  %s2288_s10 = smov [#allocation15]  }
  0x80   : > { %s2561_s21 = scalar_lea.hbm %s2889_s2, %s2949_s5  ;;  %s402_s17 = sshll.u32 %s2288_s10, 4  ;;  %s403_s17 = int_to_ptr.vmem [resolvable:$true] %s402_s17 }
  0x81   : > { %s1643_s19 = sshll.u32 %s2501_s20, 3  ;;  %s2065_s23 = scalar_lea.hbm %s2896_s9, 16 }
  0x82   : > { %p2066_p10 = scmp.ne.s32.totalorder %s2896_s9, %s2065_s23  ;;  %p2950_p12 = scmp.ne.s32.totalorder %s2939_s14, 0 }
  0x83   : > { %p2072_p6 = scmp.lt.u32.totalorder %s2065_s23, %s2896_s9 }
  0x84   : > { %p2068_p13 = pnand %p2066_p10, %p2950_p12 }
  0x86   : > { %p2069_p1 = pneg %p2068_p13 }
  0x88   : > { %p2074_p8 = pnand %p2072_p6, %p2069_p1 }
  0x8a   : > { %2077 = shalt.err (!%p2074_p8)
}
  0x8b   : > { %s2078_s5 = scalar_lea.vmem %s403_s17, 16  ;;  %s2085_s1 = scalar_lea.vmem %s403_s17, 32 }
  0x8c   : > { %p2079_p11 = scmp.ne.s32.totalorder %s403_s17, %s2078_s5  ;;  %p2086_p9 = scmp.lt.s32.totalorder %s403_s17, %s403_s17 }
  0x8d   : > { %p2087_p2 = scmp.lt.s32.totalorder %s2085_s1, %s2078_s5 }
  0x8e   : > { %p2081_p0 = pnand %p2079_p11, %p2950_p12 }
  0x8f   : > { %p2088_p4 = por %p2087_p2, %p2086_p9 }
  0x90   : > { %p2082_p5 = pneg %p2081_p0 }
  0x92   : > { %p2089_p3 = pnand %p2088_p4, %p2082_p5 }
  0x94   : > { %2092 = shalt.err (!%p2089_p3)
}
  0x95   : > { %p2951_p10 = scmp.ne.s32.totalorder %s2937_s16, 0  ;;  %s1692_s23 = sshll.u32 %s2277_s25, 7 }
  0x96   : > { %s423_s15 = scalar_lea.vmem [#allocation4], %s1643_s19  ;;  %s2586_s10 = scalar_lea.hbm %s2887_s0, %s1692_s23 }
  0x97   : > { %1833 = dma.hbm_to_vmem [thread:$0]  (!%p2951_p10), %s2896_s9, 16, %s403_s17, [#allocation14]  }
  0x98   : > { %s432_s14 = sshll.u32 %s423_s15, 4  ;;  %s420_s16 = scalar_lea.sflag [#allocation5], %s2501_s20  ;;  %s2588_s14 = int_to_ptr.vmem [resolvable:$true] %s432_s14 }
  0x99   : > { %s2093_s4 = scalar_lea.hbm %s2586_s10, 128  ;;  %s2098_s30 = scalar_lea.hbm %s2887_s0, 384 }
  0x9a   : > { %p2094_p3 = scmp.ne.s32.totalorder %s2586_s10, %s2093_s4  ;;  %p2099_p1 = scmp.lt.u32.totalorder %s2586_s10, %s2887_s0 }
  0x9b   : > { %p2100_p6 = scmp.lt.u32.totalorder %s2098_s30, %s2093_s4  ;;  %p2102_p11 = scmp.lt.u32.totalorder %s2093_s4, %s2586_s10 }
  0x9c   : > { %p2096_p12 = pnand %p2094_p3, %p2532_p7 }
  0x9d   : > { %p2101_p8 = por %p2100_p6, %p2099_p1 }
  0x9e   : > { %p2097_p13 = pneg %p2096_p12 }
  0x9f   : > { %p2103_p0 = por %p2102_p11, %p2101_p8 }
  0xa1   : > { %p2104_p5 = pnand %p2103_p0, %p2097_p13 }
  0xa3   : > { %2107 = shalt.err (!%p2104_p5)
}
  0xa4   : > { %s2108_s7 = scalar_lea.vmem %s2588_s14, 128  ;;  %s2289_s12 = smov [#allocation4]  }
  0xa5   : > { %p2109_p9 = scmp.ne.s32.totalorder %s2588_s14, %s2108_s7  ;;  %s2113_s23 = sshll.u32 %s2289_s12, 4  ;;  %s2114_s23 = int_to_ptr.vmem [resolvable:$false] %s2113_s23 }
  0xa6   : > { %s2115_s15 = scalar_lea.vmem %s2114_s23, 256  ;;  %p2116_p10 = scmp.lt.s32.totalorder %s2588_s14, %s2114_s23 }
  0xa7   : > { %p2111_p2 = pnand %p2109_p9, %p2532_p7  ;;  %p2117_p3 = scmp.lt.s32.totalorder %s2115_s15, %s2108_s7 }
  0xa9   : > { %p2112_p4 = pneg %p2111_p2  ;;  %p2118_p12 = por %p2117_p3, %p2116_p10 }
  0xab   : > { %p2119_p1 = pnand %p2118_p12, %p2112_p4 }
  0xad   : > { %2122 = shalt.err (!%p2119_p1)
}
  0xae   : > { %p2952_p13 = scmp.ne.s32.totalorder %s2945_s28, 0  ;;  %s2953_s24 = smov 4  }
  0xaf   : > { %s2954_s18 = smov 64   ;;  %s2955_s4 = sshll.u32 %s2501_s20, 2 }
  0xb0   : > { %1837 = dma.hbm_to_vmem [thread:$0]  (!%p2952_p13), %s2586_s10, 128, %s2588_s14, %s420_s16, %s2954_s18, %s2954_s18, %s2953_s24  }
  0xb1   : > { %s464_s17 = scalar_lea.vmem [#allocation9], %s2955_s4  ;;  %s1650_s30 = sshll.u32 %s2277_s25, 4 }
  0xb2   : > { %s471_s19 = sshll.u32 %s464_s17, 4  ;;  %s2123_s5 = scalar_lea.hbm %s2561_s21, 64  ;;  %s472_s19 = int_to_ptr.vmem [resolvable:$true] %s471_s19 }
  0xb3   : > { %p2124_p6 = scmp.ne.s32.totalorder %s2561_s21, %s2123_s5  ;;  %s2128_s12 = scalar_lea.hbm %s2889_s2, 192 }
  0xb4   : > { %p2129_p0 = scmp.lt.u32.totalorder %s2561_s21, %s2889_s2  ;;  %p2130_p5 = scmp.lt.u32.totalorder %s2128_s12, %s2123_s5 }
  0xb5   : > { %p2126_p8 = pnand %p2124_p6, %p2532_p7  ;;  %p2132_p2 = scmp.lt.u32.totalorder %s2123_s5, %s2561_s21 }
  0xb6   : > { %p2131_p9 = por %p2130_p5, %p2129_p0 }
  0xb7   : > { %p2127_p11 = pneg %p2126_p8 }
  0xb8   : > { %p2133_p4 = por %p2132_p2, %p2131_p9 }
  0xba   : > { %p2134_p10 = pnand %p2133_p4, %p2127_p11 }
  0xbc   : > { %2137 = shalt.err (!%p2134_p10)
}
  0xbd   : > { %s2138_s14 = scalar_lea.vmem %s472_s19, 64  ;;  %s2290_s10 = smov [#allocation9]  }
  0xbe   : > { %p2139_p3 = scmp.ne.s32.totalorder %s472_s19, %s2138_s14  ;;  %s2143_s16 = sshll.u32 %s2290_s10, 4  ;;  %s2144_s16 = int_to_ptr.vmem [resolvable:$false] %s2143_s16 }
  0xbf   : > { %s2145_s24 = scalar_lea.vmem %s2144_s16, 128  ;;  %p2146_p6 = scmp.lt.s32.totalorder %s472_s19, %s2144_s16 }
  0xc0   : > { %p2141_p12 = pnand %p2139_p3, %p2532_p7  ;;  %p2147_p8 = scmp.lt.s32.totalorder %s2145_s24, %s2138_s14 }
  0xc2   : > { %p2142_p1 = pneg %p2141_p12  ;;  %p2148_p13 = por %p2147_p8, %p2146_p6 }
  0xc4   : > { %p2149_p0 = pnand %p2148_p13, %p2142_p1 }
  0xc6   : > { %2152 = shalt.err (!%p2149_p0)
}
  0xc7   : > { %p2956_p5 = scmp.ne.s32.totalorder %s2945_s28, 0  ;;  %s2641_s17 = scalar_lea.hbm %s2890_s3, %s1650_s30 }
  0xc8   : > { %s481_s5 = scalar_lea.vmem [#allocation10], %s2501_s20  ;;  %s2957_s7 = sand.u32 1, %s2281_s26  }
  0xc9   : > { %1843 = dma.hbm_to_vmem [thread:$0]  (!%p2956_p5), %s2561_s21, 64, %s472_s19, %s2526_s8  }
  0xca   : > { %s488_s1 = sshll.u32 %s481_s5, 4  ;;  %s479_s12 = scalar_lea.sflag [#allocation11], %s2957_s7  ;;  %s489_s1 = int_to_ptr.vmem [resolvable:$true] %s488_s1 }
  0xcb   : > { %s2153_s23 = scalar_lea.hbm %s2641_s17, 16  ;;  %s2158_s19 = scalar_lea.hbm %s2890_s3, 48 }
  0xcc   : > { %p2154_p13 = scmp.ne.s32.totalorder %s2641_s17, %s2153_s23  ;;  %p2159_p2 = scmp.lt.u32.totalorder %s2641_s17, %s2890_s3 }
  0xcd   : > { %p2160_p4 = scmp.lt.u32.totalorder %s2158_s19, %s2153_s23  ;;  %p2162_p3 = scmp.lt.u32.totalorder %s2153_s23, %s2641_s17 }
  0xce   : > { %p2156_p11 = pnand %p2154_p13, %p2532_p7 }
  0xcf   : > { %p2161_p10 = por %p2160_p4, %p2159_p2 }
  0xd0   : > { %p2157_p9 = pneg %p2156_p11 }
  0xd1   : > { %p2163_p12 = por %p2162_p3, %p2161_p10 }
  0xd3   : > { %p2164_p1 = pnand %p2163_p12, %p2157_p9 }
  0xd5   : > { %2167 = shalt.err (!%p2164_p1)
}
  0xd6   : > { %s2168_s20 = scalar_lea.vmem %s489_s1, 16  ;;  %s2291_s14 = smov [#allocation10]  }
  0xd7   : > { %p2169_p6 = scmp.ne.s32.totalorder %s489_s1, %s2168_s20  ;;  %s2173_s10 = sshll.u32 %s2291_s14, 4  ;;  %s2174_s10 = int_to_ptr.vmem [resolvable:$false] %s2173_s10 }
  0xd8   : > { %s2175_s16 = scalar_lea.vmem %s2174_s10, 32  ;;  %p2176_p13 = scmp.lt.s32.totalorder %s489_s1, %s2174_s10 }
  0xd9   : > { %p2171_p8 = pnand %p2169_p6, %p2532_p7  ;;  %p2177_p11 = scmp.lt.s32.totalorder %s2175_s16, %s2168_s20 }
  0xdb   : > { %p2172_p0 = pneg %p2171_p8  ;;  %p2178_p5 = por %p2177_p11, %p2176_p13 }
  0xdd   : > { %p2179_p2 = pnand %p2178_p5, %p2172_p0 }
  0xdf   : > { %2182 = shalt.err (!%p2179_p2)
}
  0xe0   : > { %p2958_p4 = scmp.ne.s32.totalorder %s2945_s28, 0  ;;  %p2959_p9 = scmp.ne.s32.totalorder %s2936_s13, 0 }
  0xe1   : > { %s2666_s11 = sand.u32 (!%p2959_p9), 1, %s2265_s22   ;;  %p2960_p7 = scmp.ne.s32.totalorder (!%p2959_p9), %s2933_s29, 0 }
  0xe2   : > { %1846 = dma.hbm_to_vmem [thread:$0]  (!%p2958_p4), %s2641_s17, 16, %s489_s1, %s479_s12  }
  0xe3   : > { %497 = sbr.rel (%p2959_p9) target bundleno = 1725 (0x6bd), region = 68  ;;  %s1652_s24 = sshll.u32 (!%p2959_p9), %s2666_s11, 3 }
  0xe4   : > { %s500_s18 = scalar_lea.sflag (!%p2959_p9), [#allocation5], %s2666_s11  ;;  %s2670_s4 = scalar_lea.vmem (!%p2959_p9), [#allocation4], %s1652_s24 }
  0xea   : > { %2236 = dma.done.wait (%p2960_p7), %s500_s18, 128  }
  0xeb   : > { %2238 = vsyncadd (%p2960_p7), %s500_s18, 4294967168  ;;  %s508_s13 = sand.u32 1, %s2398_s27   ;;  %s1653_s28 = sshll.u32 %s2666_s11, 2 }
  0xec   : > { %s509_s17 = scalar_lea.sflag [#allocation8], %s508_s13  ;;  %s512_s5 = scalar_lea.vmem [#allocation7], %s1653_s28 }
  0xed   : > { %2240 = dma.done.wait (%p2960_p7), %s509_s17, 128  }
  0xee   : > { %2242 = vsyncadd (%p2960_p7), %s509_s17, 4294967168  ;;  %s2682_s1 = scalar_lea.vmem [#allocation9], %s1653_s28  ;;  %s527_s7 = scalar_lea.sflag [#allocation11], %s508_s13 }
  0xef   : > { %s529_s12 = scalar_lea.vmem [#allocation10], %s2666_s11 }
  0xf0   : > { %2244 = dma.done.wait (%p2960_p7), %s527_s7, 16  }
  0xf1   : > { %2246 = vsyncadd (%p2960_p7), %s527_s7, 4294967280  ;;  %p2961_p5 = scmp.eq.s32.totalorder %s2398_s27, 0 }
  0xf3   : > { %2248 = dma.done.wait (%p2961_p5), [#allocation11], 256   ;;  %p2962_p10 = pmov %p2961_p5 }
  0xf4   : > { %p2963_p3 = pmov %p2961_p5 }
  0xf5   : > { %2250 = vsyncadd (%p2962_p10), [#allocation11], 4294967040 }
  0xf6   : > { %2252 = dma.done.wait (%p2963_p3), [#allocation14], 272   ;;  %p2964_p12 = pmov %p2963_p3 }
  0xf7   : > { %v2292_v0 = vmov 0.0   ;;  %vm2293_vm0 = vmmov 0   ;;  %v1936_v1 = vld [vmem:[%s2893_s6] sm:$0xff]   ;;  %v1937_v2 = vld [vmem:[%s2893_s6 + $0x8] sm:$0xff]   ;;  %v603_v3 = vld [vmem:[%s512_s5] sm:$0xf]  ;;  %v836_v48 = vlaneseq }
  0xf8   : > { %2254 = vsyncadd (%p2964_p12), [#allocation14], 4294967024  ;;  %1722 = vmatprep.subr.bf16.mxu0 %v2292_v0  ;;  %1726 = vmatprep.mubr.msk.bf16.mxu0 %vm2293_vm0, %v2292_v0  ;;  %vm628_vm1 = vcmask 261120   ;;  %v1938_v4 = vld [vmem:[#allocation12] sm:$0xff]   ;;  %v1939_v5 = vld [vmem:[#allocation12 + $0x8] sm:$0xff]   ;;  %s2965_s30 = sld [smem:[#allocation33_spill]] }
  0xf9   : > { %1730 = vmatprep.subr.bf16.mxu1 %v2292_v0  ;;  %1734 = vmatprep.mubr.msk.bf16.mxu1 %vm2293_vm0, %v2292_v0  ;;  %v1940_v6 = vld [vmem:[%s2670_s4] sm:$0xff]   ;;  %v1941_v7 = vld [vmem:[#allocation13] sm:$0xff]   ;;  %vm673_vm2 = vcmask 257024   ;;  %s2966_s14 = sld [smem:[#allocation32_spill]]  ;;  %vm841_vm3 = vcmask 64512   ;;  %s2294_s10 = smov 112  }
  0xfa   : > { %1723 = vmatpush3.bf16.msra.mxu0 %v1936_v1  ;;  %1731 = vmatpush3.bf16.msra.mxu1 %v1941_v7  ;;  %v1942_v8 = vld [vmem:[#allocation13 + $0x8] sm:$0xff]   ;;  %s2295_s16 = smov 120   ;;  %s2296_s24 = smov 104   ;;  %v1663_v30 = vld [vmem:[#allocation15] ss:$0 sm:$0xff]  ;;  %vm915_vm4 = vcmask 1043456  }
  0xfb   : > { %1724 = vmatprep.subr.bf16.mxu0 %v2292_v0  ;;  %1732 = vmatprep.subr.bf16.mxu1 %v2292_v0  ;;  %v604_v9 = vld [vmem:[%s2682_s1] sm:$0xf]  ;;  %v2765_v49 = vshrl.u32 %v836_v48, 7  ;;  %s2967_s13 = sld [smem:[#allocation35_spill]]  ;;  %s2297_s28 = smov 8   ;;  %vm828_vm5 = vcmask 57344  }
  0xfc   : > { %v2770_v51 = vld [vmem:[%s529_s12] sm:$0x1]  ;;  %s2298_s1 = smov 16   ;;  %s2299_s7 = smov 24   ;;  %vm1362_vm6 = vcmask 130048   ;;  %vm1365_vm7 = vcmask 195584  }
  0xfd   : > { %v838_v50 = vsub.s32 0, %v2765_v49  ;;  %s2968_s12 = sld [smem:[#allocation25_spill]]  ;;  %s1658_s29 = sshll.u32 %s2666_s11, 4 }
  0xfe   : > { %1725 = vmatpush3.bf16.msra.mxu0 %v1937_v2  ;;  %1733 = vmatpush3.bf16.msra.mxu1 %v1942_v8  ;;  %v1659_v10 = vld [vmem:[%s2965_s30] ss:$0 sm:$0xff]  ;;  %s2969_s8 = sld [smem:[#allocation36_spill]]  ;;  %s595_s30 = scalar_lea.vmem [#allocation16], %s1658_s29 }
  0xff   : > { %1738 = vmatprep.subr.bf16.mxu0 %v2292_v0  ;;  %1746 = vmatprep.subr.bf16.mxu1 %v2292_v0  ;;  %v1667_v17 = vld [vmem:[%s2966_s14] ss:$0 sm:$0xff]  ;;  %v839_v52 = vrot.slane %v2770_v51, %v838_v50  ;;  %s2970_s21 = sld [smem:[#allocation28_spill]]  ;;  %s1458_s15 = sshll.u32 %s595_s30, 4  ;;  %s2837_s15 = int_to_ptr.vmem [resolvable:$true] %s1458_s15 }
 0x100   : > { %s2183_s18 = scalar_lea.vmem %s2837_s15, 256  ;;  %s2300_s4 = smov [#allocation16]  }
 0x101   : > { %1727 = vmatmul.mubr.msk.bf16.vlgmr.msra.gmra.mrb[0].mxu0 %vm628_vm1, %v603_v3  ;;  %1735 = vmatmul.mubr.msk.bf16.vlgmr.msra.gmra.mrb[0].mxu1 %vm628_vm1, %v604_v9  ;;  %p2184_p1 = scmp.ne.s32.totalorder %s2837_s15, %s2183_s18  ;;  %s2187_s17 = sshll.u32 %s2300_s4, 4  ;;  %s2188_s17 = int_to_ptr.vmem [resolvable:$false] %s2187_s17 }
 0x102   : > { %1739 = vmatpush3.bf16.msra.mxu0 %v1938_v4  ;;  %1742 = vmatprep.mubr.msk.bf16.mxu0 %vm2293_vm0, %v2292_v0  ;;  %s2189_s5 = scalar_lea.vmem %s2188_s17, 512  ;;  %p2190_p13 = scmp.lt.s32.totalorder %s2837_s15, %s2188_s17 }
 0x103   : > { %1740 = vmatprep.subr.bf16.mxu0 %v2292_v0  ;;  %1748 = vmatprep.mubr.msk.bf16.mxu1 %vm2293_vm0, %v2292_v0  ;;  %s1693_s19 = sshll.u32 %s2968_s12, 8  ;;  %p2191_p11 = scmp.lt.s32.totalorder %s2189_s5, %s2183_s18 }
 0x105   : > { %p2972_p6 = scmp.ne.s32.totalorder %s2970_s21, 0  ;;  %p2192_p2 = por %p2191_p11, %p2190_p13 }
 0x106   : > { %1741 = vmatpush3.bf16.msra.mxu0 %v1939_v5 }
 0x107   : > { %1752 = vmatprep.subr.bf16.mxu0 %v2292_v0  ;;  %p2185_p8 = pnand %p2184_p1, %p2972_p6 }
 0x109   : > { %1743 = vmatmul.mubr.msk.bf16.vlgmr.msra.gmra.mrb[4].mxu0 %vm628_vm1, %v1940_v6  ;;  %p2186_p0 = pneg %p2185_p8 }
 0x10a   : > { %1754 = vmatprep.mubr.msk.bf16.mxu0 %vm2293_vm0, %v2292_v0 }
 0x10b   : > { %p2193_p4 = pnand %p2192_p2, %p2186_p0 }
 0x1d4   : > { %v666_v11 = vpop.f32.mrb[0].mxu0  ;;  %v735_v31 = vpop.f32.mrb[0].mxu1 }
 0x1d5   : > { %v667_v12 = vadd.f32 %v1659_v10, %v666_v11  ;;  %v1728_v13 = vpop.f32.mrb[1].mxu0  ;;  %v736_v32 = vadd.f32 %v1663_v30, %v735_v31  ;;  %v1736_v33 = vpop.f32.mrb[1].mxu1 }
 0x1d6   : > { %v669_v14 = vpop.f32.mrb[2].mxu0  ;;  %v738_v34 = vpop.f32.mrb[2].mxu1 }
 0x1d7   : > { %v672_v15 = vpack.c.bf16 %v667_v12, %v667_v12  ;;  %v1729_v16 = vpop.f32.mrb[3].mxu0  ;;  %v741_v35 = vpack.c.bf16 %v736_v32, %v736_v32  ;;  %v1737_v36 = vpop.f32.mrb[3].mxu1 }
 0x1d9   : > { %674 = vst.msk [vmem:[#allocation2] sm:$0xf] %vm673_vm2, %v672_v15  ;;  %742 = vst.msk [vmem:[#allocation3] sm:$0xf] %vm673_vm2, %v741_v35 }
 0x1dc   : > { %v811_v18 = vpop.f32.mrb[4].mxu0 }
 0x1dd   : > { %v812_v19 = vadd.f32 %v1667_v17, %v811_v18  ;;  %v1744_v20 = vpop.f32.mrb[5].mxu0 }
 0x1de   : > { %v814_v21 = vpop.f32.mrb[6].mxu0 }
 0x1df   : > { %v818_v22 = vmul.f32 0.35355338, %v812_v19  ;;  %v815_v23 = vadd.f32 %v1667_v17, %v814_v21  ;;  %v1745_v24 = vpop.f32.mrb[7].mxu0 }
 0x1e0   : > { %v821_v25 = vld [vmem:[#allocation2] sm:$0xf]  ;;  %v2745_v37 = vld [vmem:[#allocation3] sm:$0xf] }
 0x1e1   : > { %v819_v26 = vmul.f32 0.35355338, %v815_v23  ;;  %v846_v27 = vsel %vm841_vm3, %v821_v25, 0  ;;  %v1675_v28 = vcombine.low %v821_v25, %v821_v25  ;;  %v917_v38 = vsel %vm915_vm4, %v2745_v37, 0 }
 0x1e2   : > { %1747 = vmatpush3.bf16.xpose.msra.mxu1 %v846_v27  ;;  %1753 = vmatpush3.bf16.msra.mxu0 %v917_v38  ;;  %v1677_v32 = vcombine.low %v2745_v37, %v2745_v37 }
 0x1e3   : > { %v820_v29 = vpack.c.bf16 %v819_v26, %v818_v22  ;;  %1092 = vrot.lane.b32.xlu1 %v1675_v28, %s2294_s10  ;;  %966 = vrot.lane.b32.xlu0 %v1675_v28, %s2295_s16 }
 0x1e4   : > { %1758 = vmatprep.subr.bf16.mxu1 %v2292_v0  ;;  %1764 = vmatprep.subr.bf16.mxu0 %v2292_v0 }
 0x1e7   : > { %1090 = vrot.lane.b32.xlu1 %v820_v29, %s2294_s10  ;;  %961 = vrot.lane.b32.xlu0 %v820_v29, %s2295_s16 }
 0x1e9   : > { %1749 = vmatmul.mubr.msk.bf16.vlgmr.msra.gmra.mrb[4].mxu1 %vm841_vm3, %v820_v29 }
 0x1ea   : > { %1760 = vmatprep.mubr.msk.bf16.mxu1 %vm2293_vm0, %v2292_v0 }
 0x1eb   : > { %1213 = vrot.lane.b32.xlu1 %v820_v29, %s2296_s24  ;;  %1215 = vrot.lane.b32.xlu0 %v1675_v28, %s2296_s24 }
 0x255   : > { %v967_v39 = vpop.permute.xlu0 %966  ;;  %v1093_v41 = vpop.permute.xlu1 %1092 }
 0x256   : > { %v972_v40 = vsel %vm841_vm3, %v967_v39, 0  ;;  %v1098_v43 = vsel %vm841_vm3, %v1093_v41, 0 }
 0x257   : > { %1759 = vmatpush3.bf16.xpose.msra.mxu1 %v972_v40 }
 0x258   : > { %1770 = vmatprep.subr.bf16.mxu1 %v2292_v0 }
 0x259   : > { %v962_v42 = vpop.permute.xlu0 %961  ;;  %v1091_v45 = vpop.permute.xlu1 %1090 }
 0x25d   : > { %v1216_v44 = vpop.permute.xlu0 %1215  ;;  %v1214_v47 = vpop.permute.xlu1 %1213 }
 0x25e   : > { %1761 = vmatmul.mubr.msk.bf16.vlgmr.msra.gmra.mrb[8].mxu1 %vm841_vm3, %v962_v42  ;;  %v1221_v46 = vsel %vm841_vm3, %v1216_v44, 0 }
 0x25f   : > { %1771 = vmatpush3.bf16.xpose.msra.mxu1 %v1098_v43  ;;  %1772 = vmatprep.mubr.msk.bf16.mxu1 %vm2293_vm0, %v2292_v0 }
 0x260   : > { %1782 = vmatprep.subr.bf16.mxu1 %v2292_v0 }
 0x266   : > { %1773 = vmatmul.mubr.msk.bf16.vlgmr.msra.gmra.mrb[12].mxu1 %vm841_vm3, %v1091_v45 }
 0x267   : > { %1783 = vmatpush3.bf16.xpose.msra.mxu1 %v1221_v46  ;;  %1784 = vmatprep.mubr.msk.bf16.mxu1 %vm2293_vm0, %v2292_v0 }
 0x268   : > { %1794 = vmatprep.subr.bf16.mxu1 %v2292_v0 }
 0x26e   : > { %1785 = vmatmul.mubr.msk.bf16.vlgmr.msra.gmra.mrb[16].mxu1 %vm841_vm3, %v1214_v47 }
 0x26f   : > { %1798 = vmatprep.mubr.msk.bf16.mxu1 %vm2293_vm0, %v2292_v0 }
 0x2bc   : > { %v882_v53 = vpop.f32.mrb[4].mxu1 }
 0x2bd   : > { %v883_v54 = vadd.f32 %v882_v53, %v839_v52  ;;  %v1750_v55 = vpop.f32.mrb[5].mxu1 }
 0x2be   : > { %v885_v56 = vpop.f32.mrb[6].mxu1 }
 0x2bf   : > { %v886_v57 = vadd.f32 %v885_v56, %v839_v52  ;;  %v1751_v58 = vpop.f32.mrb[7].mxu1  ;;  %v889_v59 = vsel %vm841_vm3, %v883_v54, -inf }
 0x2c0   : > { %890 = vmax.xlane.f32.xlu0 %v889_v59 }
 0x2c1   : > { %v892_v60 = vsel %vm841_vm3, %v886_v57, -inf }
 0x2c2   : > { %893 = vmax.xlane.f32.xlu1 %v892_v60 }
 0x331   : > { %v1008_v61 = vpop.f32.mrb[8].mxu1 }
 0x332   : > { %v1009_v62 = vadd.f32 %v1008_v61, %v839_v52  ;;  %v1762_v63 = vpop.f32.mrb[9].mxu1 }
 0x333   : > { %v1011_v1 = vpop.f32.mrb[10].mxu1 }
 0x334   : > { %v1012_v2 = vadd.f32 %v1011_v1, %v839_v52  ;;  %v1763_v3 = vpop.f32.mrb[11].mxu1  ;;  %v1015_v4 = vsel %vm841_vm3, %v1009_v62, -inf }
 0x335   : > { %1016 = vmax.xlane.f32.xlu0 %v1015_v4 }
 0x336   : > { %v1018_v5 = vsel %vm841_vm3, %v1012_v2, -inf }
 0x339   : > { %1019 = vmax.xlane.f32.xlu0 %v1018_v5  ;;  %v1134_v6 = vpop.f32.mrb[12].mxu1 }
 0x33a   : > { %v1135_v7 = vadd.f32 %v1134_v6, %v839_v52  ;;  %v1774_v8 = vpop.f32.mrb[13].mxu1 }
 0x33b   : > { %v1137_v9 = vpop.f32.mrb[14].mxu1 }
 0x33c   : > { %v1138_v10 = vadd.f32 %v1137_v9, %v839_v52  ;;  %v1775_v11 = vpop.f32.mrb[15].mxu1  ;;  %v1141_v12 = vsel %vm841_vm3, %v1135_v7, -inf }
 0x33d   : > { %1142 = vmax.xlane.f32.xlu1 %v1141_v12 }
 0x33e   : > { %v1144_v13 = vsel %vm841_vm3, %v1138_v10, -inf }
 0x33f   : > { %1145 = vmax.xlane.f32.xlu0 %v1144_v13 }
 0x341   : > { %v1257_v14 = vpop.f32.mrb[16].mxu1 }
 0x342   : > { %v1258_v15 = vadd.f32 %v1257_v14, %v839_v52  ;;  %v1786_v16 = vpop.f32.mrb[17].mxu1 }
 0x343   : > { %v1260_v17 = vpop.f32.mrb[18].mxu1 }
 0x344   : > { %v1261_v18 = vadd.f32 %v1260_v17, %v839_v52  ;;  %v1787_v19 = vpop.f32.mrb[19].mxu1  ;;  %v1264_v20 = vsel %vm841_vm3, %v1258_v15, -inf }
 0x345   : > { %1265 = vmax.xlane.f32.xlu1 %v1264_v20 }
 0x346   : > { %v1267_v21 = vsel %vm841_vm3, %v1261_v18, -inf }
 0x347   : > { %1268 = vmax.xlane.f32.xlu0 %v1267_v21 }
 0x34d   : > { %v891_v22 = vpop.xlane.xlu0 %890 }
 0x34e   : > { %v895_v23 = vsub.f32 %v883_v54, %v891_v22 }
 0x34f   : > { %v894_v24 = vpop.xlane.xlu1 %893 }
 0x350   : > { %v897_v25 = vmul.f32 1.442695, %v895_v23  ;;  %v896_v26 = vsub.f32 %v886_v57, %v894_v24 }
 0x352   : > { %1947 = vpow2.f32 %v897_v25  ;;  %v899_v27 = vmul.f32 1.442695, %v896_v26 }
 0x354   : > { %1949 = vpow2.f32 %v899_v27 }
 0x35c   : > { %v1948_v28 = vpop.eup %1947 }
 0x35d   : > { %v901_v29 = vsel %vm841_vm3, %v1948_v28, 0.0 }
 0x35e   : > { %v1950_v30 = vpop.eup %1949  ;;  %902 = vadd.xlane.f32.xlu1 %v901_v29 }
 0x35f   : > { %v904_v31 = vsel %vm841_vm3, %v1950_v30, 0.0 }
 0x360   : > { %905 = vadd.xlane.f32.xlu0 %v904_v31 }
 0x36f   : > { %1041 = vrot.lane.b32.xlu1 %v1677_v32, %s2295_s16 }
 0x3c2   : > { %v1017_v33 = vpop.xlane.xlu0 %1016 }
 0x3c3   : > { %v1021_v34 = vsub.f32 %v1009_v62, %v1017_v33 }
 0x3c5   : > { %v1023_v35 = vmul.f32 1.442695, %v1021_v34 }
 0x3c6   : > { %v1020_v36 = vpop.xlane.xlu0 %1019 }
 0x3c7   : > { %1951 = vpow2.f32 %v1023_v35  ;;  %v1022_v38 = vsub.f32 %v1012_v2, %v1020_v36 }
 0x3c9   : > { %v1025_v39 = vmul.f32 1.442695, %v1022_v38 }
 0x3ca   : > { %v1143_v40 = vpop.xlane.xlu1 %1142 }
 0x3cb   : > { %1953 = vpow2.f32 %v1025_v39  ;;  %v1147_v41 = vsub.f32 %v1135_v7, %v1143_v40 }
 0x3cc   : > { %v1146_v42 = vpop.xlane.xlu0 %1145 }
 0x3cd   : > { %v1149_v43 = vmul.f32 1.442695, %v1147_v41  ;;  %v1148_v44 = vsub.f32 %v1138_v10, %v1146_v42 }
 0x3cf   : > { %1955 = vpow2.f32 %v1149_v43  ;;  %v1151_v45 = vmul.f32 1.442695, %v1148_v44 }
 0x3d1   : > { %v1952_v46 = vpop.eup %1951  ;;  %1957 = vpow2.f32 %v1151_v45  ;;  %v1945_v45 = vld [vmem:[%s2967_s13] sm:$0xff]  }
 0x3d2   : > { %v1266_v37 = vpop.xlane.xlu1 %1265  ;;  %v1027_v47 = vsel %vm841_vm3, %v1952_v46, 0.0  ;;  %1795 = vmatpush3.bf16.msra.mxu1 %v1945_v45 }
 0x3d3   : > { %v1270_v48 = vsub.f32 %v1258_v15, %v1266_v37  ;;  %1028 = vadd.xlane.f32.xlu1 %v1027_v47  ;;  %1796 = vmatprep.subr.bf16.mxu1 %v2292_v0 }
 0x3d4   : > { %v1269_v52 = vpop.xlane.xlu0 %1268 }
 0x3d5   : > { %v1954_v53 = vpop.eup %1953  ;;  %v1272_v54 = vmul.f32 1.442695, %v1270_v48  ;;  %v1271_v55 = vsub.f32 %v1261_v18, %v1269_v52  ;;  %v1946_v52 = vld [vmem:[%s2967_s13 + $0x8] sm:$0xff]  }
 0x3d6   : > { %v1030_v56 = vsel %vm841_vm3, %v1954_v53, 0.0  ;;  %1797 = vmatpush3.bf16.msra.mxu1 %v1946_v52 }
 0x3d7   : > { %1959 = vpow2.f32 %v1272_v54  ;;  %v1274_v57 = vmul.f32 1.442695, %v1271_v55  ;;  %1031 = vadd.xlane.f32.xlu0 %v1030_v56 }
 0x3d9   : > { %v1956_v58 = vpop.eup %1955  ;;  %1961 = vpow2.f32 %v1274_v57 }
 0x3da   : > { %v1153_v59 = vsel %vm841_vm3, %v1956_v58, 0.0 }
 0x3db   : > { %v1958_v60 = vpop.eup %1957  ;;  %1154 = vadd.xlane.f32.xlu1 %v1153_v59 }
 0x3dc   : > { %v1156_v61 = vsel %vm841_vm3, %v1958_v60, 0.0 }
 0x3dd   : > { %1157 = vadd.xlane.f32.xlu0 %v1156_v61  ;;  %v829_v61 = vsel %vm828_vm5, %v2770_v51, -inf }
 0x3e1   : > { %v1960_v62 = vpop.eup %1959 }
 0x3e2   : > { %v1276_v63 = vsel %vm841_vm3, %v1960_v62, 0.0 }
 0x3e3   : > { %v1962_v1 = vpop.eup %1961  ;;  %1277 = vadd.xlane.f32.xlu1 %v1276_v63 }
 0x3e4   : > { %v1279_v2 = vsel %vm841_vm3, %v1962_v1, 0.0 }
 0x3e5   : > { %1280 = vadd.xlane.f32.xlu0 %v1279_v2 }
 0x3eb   : > { %v903_v3 = vpop.xlane.xlu1 %902 }
 0x3ec   : > { %1963 = vrcp.f32 %v903_v3 }
 0x3ed   : > { %v906_v4 = vpop.xlane.xlu0 %905 }
 0x3ee   : > { %1965 = vrcp.f32 %v906_v4 }
 0x3ef   : > { %v1042_v9 = vpop.permute.xlu1 %1041 }
 0x3f0   : > { %v1047_v11 = vsel %vm915_vm4, %v1042_v9, 0 }
 0x3f4   : > { %1287 = vrot.lane.b32.xlu1 %v1677_v32, %s2296_s24  ;;  %s1443_s24 = scalar_lea.sflag [#allocation6], %s2666_s11 }
 0x3f6   : > { %v1964_v5 = vpop.eup %1963 }
 0x3f7   : > { %v909_v7 = vmul.f32 %v1964_v5, %v1948_v28 }
 0x3f8   : > { %v1966_v6 = vpop.eup %1965 }
 0x3f9   : > { %v910_v8 = vmul.f32 %v1966_v6, %v1950_v30 }
 0x3fb   : > { %1164 = vrot.lane.b32.xlu0 %v1677_v32, %s2294_s10  ;;  %v911_v10 = vpack.c.bf16 %v910_v8, %v909_v7  ;;  %s2971_s10 = sld [smem:[#allocation37_spill]] }
 0x3fd   : > { %1755 = vmatmul.mubr.msk.bf16.vlgmr.msra.gmra.mrb[8].mxu0 %vm841_vm3, %v911_v10 }
 0x3fe   : > { %1765 = vmatpush3.bf16.msra.mxu0 %v1047_v11  ;;  %1766 = vmatprep.mubr.msk.bf16.mxu0 %vm2293_vm0, %v2292_v0 }
 0x3ff   : > { %1776 = vmatprep.subr.bf16.mxu0 %v2292_v0 }
 0x401   : > { %s2834_s16 = scalar_lea.hbm %s2971_s10, %s1693_s19 }
 0x460   : > { %v1029_v12 = vpop.xlane.xlu1 %1028 }
 0x461   : > { %1967 = vrcp.f32 %v1029_v12 }
 0x464   : > { %v1032_v13 = vpop.xlane.xlu0 %1031 }
 0x465   : > { %1969 = vrcp.f32 %v1032_v13 }
 0x468   : > { %v1155_v14 = vpop.xlane.xlu1 %1154 }
 0x469   : > { %1971 = vrcp.f32 %v1155_v14 }
 0x46a   : > { %v1158_v15 = vpop.xlane.xlu0 %1157 }
 0x46b   : > { %1973 = vrcp.f32 %v1158_v15  ;;  %v1968_v16 = vpop.eup %1967 }
 0x46c   : > { %v1035_v18 = vmul.f32 %v1968_v16, %v1952_v46 }
 0x46f   : > { %v1970_v17 = vpop.eup %1969 }
 0x470   : > { %v1036_v19 = vmul.f32 %v1970_v17, %v1954_v53  ;;  %v1278_v20 = vpop.xlane.xlu1 %1277 }
 0x471   : > { %1975 = vrcp.f32 %v1278_v20 }
 0x472   : > { %v1281_v21 = vpop.xlane.xlu0 %1280  ;;  %v1037_v22 = vpack.c.bf16 %v1036_v19, %v1035_v18  ;;  %v1686_v18 = vld [vmem:[%s2969_s8] ss:$0 sm:$0xff] }
 0x473   : > { %1977 = vrcp.f32 %v1281_v21  ;;  %v1972_v23 = vpop.eup %1971 }
 0x474   : > { %1767 = vmatmul.mubr.msk.bf16.vlgmr.msra.gmra.mrb[12].mxu0 %vm841_vm3, %v1037_v22  ;;  %v1161_v28 = vmul.f32 %v1972_v23, %v1956_v58  ;;  %v1288_v29 = vpop.permute.xlu1 %1287 }
 0x475   : > { %v1974_v24 = vpop.eup %1973  ;;  %1778 = vmatprep.mubr.msk.bf16.mxu0 %vm2293_vm0, %v2292_v0  ;;  %v1293_v32 = vsel %vm915_vm4, %v1288_v29, 0 }
 0x476   : > { %v1162_v25 = vmul.f32 %v1974_v24, %v1958_v60  ;;  %v1165_v26 = vpop.permute.xlu0 %1164 }
 0x477   : > { %v1170_v27 = vsel %vm915_vm4, %v1165_v26, 0 }
 0x478   : > { %1777 = vmatpush3.bf16.msra.mxu0 %v1170_v27  ;;  %v1163_v30 = vpack.c.bf16 %v1162_v25, %v1161_v28 }
 0x479   : > { %1788 = vmatprep.subr.bf16.mxu0 %v2292_v0 }
 0x47b   : > { %v1976_v31 = vpop.eup %1975 }
 0x47c   : > { %1779 = vmatmul.mubr.msk.bf16.vlgmr.msra.gmra.mrb[16].mxu0 %vm841_vm3, %v1163_v30  ;;  %v1284_v35 = vmul.f32 %v1976_v31, %v1960_v62 }
 0x47d   : > { %v1978_v33 = vpop.eup %1977  ;;  %1789 = vmatpush3.bf16.msra.mxu0 %v1293_v32  ;;  %1790 = vmatprep.mubr.msk.bf16.mxu0 %vm2293_vm0, %v2292_v0 }
 0x47e   : > { %v1285_v34 = vmul.f32 %v1978_v33, %v1962_v1 }
 0x480   : > { %v1286_v36 = vpack.c.bf16 %v1285_v34, %v1284_v35 }
 0x484   : > { %1791 = vmatmul.mubr.msk.bf16.vlgmr.msra.gmra.mrb[20].mxu0 %vm841_vm3, %v1286_v36 }
 0x4d0   : > { %v953_v38 = vpop.f32.mrb[8].mxu0 }
 0x4d1   : > { %v1756_v39 = vpop.f32.mrb[9].mxu0 }
 0x4d2   : > { %v956_v40 = vpop.f32.mrb[10].mxu0 }
 0x4d3   : > { %v1757_v41 = vpop.f32.mrb[11].mxu0 }
 0x547   : > { %v1083_v42 = vpop.f32.mrb[12].mxu0 }
 0x548   : > { %v1768_v43 = vpop.f32.mrb[13].mxu0 }
 0x549   : > { %v1086_v44 = vpop.f32.mrb[14].mxu0 }
 0x54a   : > { %v1921_v46 = vpack.i.bf16 %v1086_v44, %v1083_v42  ;;  %v1769_v37 = vpop.f32.mrb[15].mxu0 }
 0x54c   : > { %1922 = vrot.lane.b32.xlu1 %v1921_v46, %s2297_s28 }
 0x54f   : > { %v1206_v47 = vpop.f32.mrb[16].mxu0 }
 0x550   : > { %v1780_v48 = vpop.f32.mrb[17].mxu0 }
 0x551   : > { %v1209_v53 = vpop.f32.mrb[18].mxu0 }
 0x552   : > { %v1926_v54 = vpack.i.bf16 %v1209_v53, %v1206_v47  ;;  %v1781_v55 = vpop.f32.mrb[19].mxu0 }
 0x554   : > { %1927 = vrot.lane.b32.xlu0 %v1926_v54, %s2298_s1 }
 0x557   : > { %v1329_v56 = vpop.f32.mrb[20].mxu0 }
 0x558   : > { %v1792_v57 = vpop.f32.mrb[21].mxu0 }
 0x559   : > { %v1332_v58 = vpop.f32.mrb[22].mxu0 }
 0x55a   : > { %v1931_v59 = vpack.i.bf16 %v1332_v58, %v1329_v56  ;;  %v1793_v60 = vpop.f32.mrb[23].mxu0 }
 0x55c   : > { %1932 = vrot.lane.b32.xlu1 %v1931_v59, %s2299_s7 }
 0x573   : > { %830 = vmax.xlane.f32.xlu0 %v829_v61 }
 0x5be   : > { %v1923_v62 = vpop.permute.xlu1 %1922 }
 0x5bf   : > { %v1925_v1 = vunpack.i.h.bf16 %v1923_v62  ;;  %v1924_v2 = vunpack.i.l.bf16 %v1923_v62 }
 0x5c1   : > { %v1361_v6 = vsel %vm841_vm3, %v956_v40, %v1925_v1  ;;  %v1360_v7 = vsel %vm841_vm3, %v953_v38, %v1924_v2 }
 0x5c6   : > { %v1928_v63 = vpop.permute.xlu0 %1927 }
 0x5c7   : > { %v1930_v3 = vunpack.i.h.bf16 %v1928_v63  ;;  %v1929_v4 = vunpack.i.l.bf16 %v1928_v63 }
 0x5c9   : > { %v1364_v10 = vsel %vm1362_vm6, %v1361_v6, %v1930_v3  ;;  %v1363_v51 = vsel %vm1362_vm6, %v1360_v7, %v1929_v4 }
 0x5ce   : > { %v1933_v5 = vpop.permute.xlu1 %1932 }
 0x5cf   : > { %v1935_v8 = vunpack.i.h.bf16 %v1933_v5  ;;  %v1934_v9 = vunpack.i.l.bf16 %v1933_v5 }
 0x5d1   : > { %v1367_v11 = vsel %vm1365_vm7, %v1364_v10, %v1935_v8  ;;  %v1366_v12 = vsel %vm1365_vm7, %v1363_v51, %v1934_v9 }
 0x5d2   : > { %v1368_v13 = vpack.c.bf16 %v1367_v11, %v1366_v12 }
 0x5d4   : > { %1799 = vmatmul.mubr.msk.bf16.vlgmr.msra.gmra.mrb[20].mxu1 %vm628_vm1, %v1368_v13 }
 0x600   : > { %v831_v14 = vpop.xlane.xlu0 %830 }
 0x601   : > { %vm832_vm8 = vcmp.eq.f32.partialorder %v831_v14, 0.0 }
 0x602   : > { %v1672_v15 = vsel %vm832_vm8, 1.0, %v2292_v0 }
 0x603   : > { %v1428_v16 = vrot.slane %v1672_v15, %v838_v50 }
 0x6a7   : > { %v1418_v17 = vpop.f32.mrb[20].mxu1 }
 0x6a8   : > { %v1429_v19 = vmul.f32 %v1428_v16, %v1418_v17  ;;  %v1800_v20 = vpop.f32.mrb[21].mxu1 }
 0x6a9   : > { %v1421_v21 = vpop.f32.mrb[22].mxu1 }
 0x6aa   : > { %v1438_v22 = vadd.f32 %v1686_v18, %v1429_v19  ;;  %v1430_v23 = vmul.f32 %v1428_v16, %v1421_v21  ;;  %v1801_v0 = vpop.f32.mrb[23].mxu1 }
 0x6ac   : > { %1440 = vst.msk [vmem:[%s595_s30] sm:$0xff] %vm628_vm1, %v1438_v22  ;;  %v1439_v49 = vadd.f32 %v1686_v18, %v1430_v23 }
 0x6ae   : > { %1441 = vst.msk [vmem:[%s595_s30 + $0x8] sm:$0xff] %vm628_vm1, %v1439_v49 }
 0x6af   : > { %2196 = shalt.err (!%p2193_p4)
}
 0x6b0   : > { %s2197_s1 = scalar_lea.hbm %s2834_s16, 256  ;;  %s2201_s29 = scalar_lea.hbm %s2971_s10, 768 }
 0x6b1   : > { %p2198_p9 = scmp.ne.s32.totalorder %s2834_s16, %s2197_s1  ;;  %p2202_p10 = scmp.lt.u32.totalorder %s2834_s16, %s2971_s10 }
 0x6b2   : > { %p2203_p3 = scmp.lt.u32.totalorder %s2201_s29, %s2197_s1  ;;  %p2205_p1 = scmp.lt.u32.totalorder %s2197_s1, %s2834_s16 }
 0x6b3   : > { %p2199_p7 = pnand %p2198_p9, %p2972_p6 }
 0x6b4   : > { %p2204_p12 = por %p2203_p3, %p2202_p10 }
 0x6b5   : > { %p2200_p5 = pneg %p2199_p7 }
 0x6b6   : > { %p2206_p8 = por %p2205_p1, %p2204_p12 }
 0x6b8   : > { %p2207_p0 = pnand %p2206_p8, %p2200_p5 }
 0x6ba   : > { %2210 = shalt.err (!%p2207_p0)
}
 0x6bb   : > { %s2301_s8 = smov 128  }
 0x6bc   : > { %1822 = dma.vmem_to_hbm [thread:$0]  (%p2972_p6), %s2837_s15, 256, %s2834_s16, %s1443_s24, %s2301_s8, %s2301_s8, %s2297_s28  }
 0x6bd PF: > { %s2973_s19 = sld [smem:[#allocation23_spill]]  ;;  %s2974_s30 = sld [smem:[#allocation26_spill]] }
 0x6be   : > { %p1858_p13 = scmp.ge.s32.totalorder %s2281_s26, 2 }
 0x6c3   : > { %s1473_s20 = sand.u32 1, %s2973_s19   ;;  %p2975_p11 = scmp.ne.s32.totalorder %s2974_s30, 0 }
 0x6c4   : > { %s1474_s14 = scalar_lea.sflag [#allocation6], %s1473_s20 }
 0x6c5   : > { %p1848_p2 = pnand %p1858_p13, %p2975_p11 }
 0x6c7   : > { %2256 = dma.done.wait (!%p1848_p2), %s1474_s14, 256  }
 0x6c8   : > { %2258 = vsyncadd (!%p1848_p2), %s1474_s14, 4294967040  ;;  %s35_s26 = sadd.s32 1, %s2281_s26   ;;  %s2976_s18 = sld [smem:[#allocation24_spill]] }
 0x6c9   : > { %p32_p4 = scmp.ge.s32.totalorder %s35_s26, 5   ;;  %s2977_s23 = sld [smem:[#allocation29_spill]] }
 0x6ca   : > { %s2978_s11 = sld [smem:[#allocation27_spill]]  ;;  %s2979_s21 = smov %s2265_s22 }
 0x6cb   : > { %s2981_s24 = smov %s2277_s25  ;;  %34 = sbr.rel (!%p32_p4) target bundleno = 20 (0x14), region = 166 }
 0x6ce   : > { %s2980_s22 = smov %s2976_s18 }
 0x6d0   : > { %s2982_s25 = smov %s2978_s11 }
 0x6d2   :  { %1479 = vsyncpa [#allocation5], 1 }
 0x6d3   :  { %1481 = vsyncpa [#allocation5 + $0x1], 1 }
 0x6d4   :  { %1482 = vsyncpa [#allocation8], 1 }
 0x6d5   :  { %1484 = vsyncpa [#allocation8 + $0x1], 1 }
 0x6d6   :  { %1485 = vsyncpa [#allocation11], 1 }
 0x6d7   :  { %1487 = vsyncpa [#allocation11 + $0x1], 1 }
 0x6d8   :  { %1488 = vsyncpa [#allocation14], 1 }
 0x6d9   :  { %1489 = vsyncpa [#allocation6], 1 }
 0x6da   :  { %1491 = vsyncpa [#allocation6 + $0x1], 1 }

</bundles_post_ra>
